<compile_context>
chip_gen: v6e
topology: v6e:2x2x1
jax: 0.10.0
libtpu: 0.0.40
codegen_flags: <defaults>
</compile_context>

<pallas_src>
import jax
import jax.numpy as jnp
from jax.experimental import pallas as pl
from jax.experimental.pallas import tpu as pltpu

INPUT_SIZE = 4800
HIDDEN_SIZE = [256, 64]
NUM_CLASSES = 2

H1, H2 = HIDDEN_SIZE
LANE = 128
K_PAD = ((INPUT_SIZE + LANE - 1) // LANE) * LANE   # 4864 (multiple of 128)


def _round_up(n, m):
    return ((n + m - 1) // m) * m


def _choose_batch_tile(B):
    """>=2 tiles for B>=32 (both v7x TensorCores busy); cap 512 rows so the
    double-buffered bf16 x blocks stay well inside scoped VMEM on all gens."""
    if B < 32:
        return max(16, _round_up(B, 16))
    return min(512, _round_up(-(-B // 2), 16))


def mlp_kernel(x_ref, w1_ref, w2_ref, w3_ref, b_ref, out_ref):
    """Grid = (batch_tiles,). x_ref is bf16; all matmuls accumulate in f32."""
    b1 = b_ref[0:1, 0:H1]            # (1, 256)
    b2 = b_ref[1:2, 0:H2]            # (1, 64)
    b3 = b_ref[2:3, 0:NUM_CLASSES]   # (1, 2)

    # Layer 1: bf16 x bf16 -> f32 on the MXU (zero-padded K rows contribute 0).
    h = jnp.dot(x_ref[...], w1_ref[...],
                preferred_element_type=jnp.float32) + b1
    h = jnp.maximum(h, 0.0)                                       # ReLU
    # Layer 2.
    h = jnp.dot(h.astype(jnp.bfloat16), w2_ref[...],
                preferred_element_type=jnp.float32) + b2
    h = jnp.maximum(h, 0.0)                                       # ReLU
    # Layer 3 (also on the native bf16 -> f32 MXU path).
    o = jnp.dot(h.astype(jnp.bfloat16), w3_ref[...],
                preferred_element_type=jnp.float32) + b3
    out_ref[...] = o.astype(out_ref.dtype)


def neural_net_forward(x, params):
    """x: (B, 4800) float (any dtype).  params: layout from init_params()."""
    w1, w2, w3, biases = params
    B, F = x.shape
    assert F == INPUT_SIZE, F

    batch_tile = _choose_batch_tile(B)
    b_pad = _round_up(B, batch_tile)

    # Single wrapper-side copy: cast to bf16 fused with the (row, K) zero-pad.
    # W1 is stored pre-padded with zero rows 4800..4863, so the K padding
    # contributes exactly nothing to the layer-1 matmul.
    x_p = jnp.pad(x.astype(jnp.bfloat16),
                  ((0, b_pad - B), (0, K_PAD - F)))

    grid = (b_pad // batch_tile,)

    flops = 2 * b_pad * (K_PAD * H1 + H1 * H2 + H2 * NUM_CLASSES)
    bytes_accessed = (x_p.size * x_p.dtype.itemsize
                      + w1.size * w1.dtype.itemsize          # read once (resident)
                      + w2.size * w2.dtype.itemsize
                      + w3.size * w3.dtype.itemsize
                      + biases.size * biases.dtype.itemsize
                      + b_pad * NUM_CLASSES * 4)

    out = pl.pallas_call(
        mlp_kernel,
        out_shape=jax.ShapeDtypeStruct((b_pad, NUM_CLASSES), jnp.float32),
        grid_spec=pltpu.PrefetchScalarGridSpec(
            num_scalar_prefetch=0,
            grid=grid,
            in_specs=[
                # x: new block per batch tile (the only streaming input).
                pl.BlockSpec((batch_tile, K_PAD), lambda i: (i, 0)),
                # W1/W2/W3/biases: constant block index -> DMA'd once, VMEM-resident.
                pl.BlockSpec((K_PAD, H1), lambda i: (0, 0)),
                pl.BlockSpec((H1, H2), lambda i: (0, 0)),
                pl.BlockSpec((H2, NUM_CLASSES), lambda i: (0, 0)),
                pl.BlockSpec((3, H1), lambda i: (0, 0)),
            ],
            out_specs=pl.BlockSpec((batch_tile, NUM_CLASSES),
                                   lambda i: (i, 0)),
        ),
        compiler_params=pltpu.CompilerParams(
            dimension_semantics=("parallel",),
            vmem_limit_bytes=32 * 1024 * 1024),
        cost_estimate=pl.CostEstimate(
            flops=flops, transcendentals=0, bytes_accessed=bytes_accessed),
    )(x_p, w1, w2, w3, biases)

    return out[:B]


def pack_params(raw):
    """raw = [(w1,b1),(w2,b2),(w3,b3)], each w in (in_features, out_features)
    layout (transposed vs. nn.Linear storage), all f32.

    Kernel layout:
      w1: (K_PAD, 256) bf16, zero-padded rows beyond INPUT_SIZE
      w2: (256, 64)    bf16
      w3: (64, 2)      bf16
      biases: (3, 256) f32 -- row 0 = b1, row 1 = b2 (padded), row 2 = b3 (padded)
    """
    (w1, b1), (w2, b2), (w3, b3) = raw
    w1p = jnp.zeros((K_PAD, H1), jnp.bfloat16).at[:INPUT_SIZE].set(
        w1.astype(jnp.bfloat16))
    w2p = w2.astype(jnp.bfloat16)
    w3p = w3.astype(jnp.bfloat16)
    biases = jnp.zeros((3, H1), jnp.float32)
    biases = biases.at[0, :H1].set(b1)
    biases = biases.at[1, :H2].set(b2)
    biases = biases.at[2, :NUM_CLASSES].set(b3)
    return (w1p, w2p, w3p, biases)


def init_params(key):
    """Mirrors nn.Linear's U(-1/sqrt(fan_in), 1/sqrt(fan_in)) init."""
    dims = [INPUT_SIZE] + HIDDEN_SIZE + [NUM_CLASSES]
    raw = []
    for i in range(len(dims) - 1):
        fan_in, fan_out = dims[i], dims[i + 1]
        key, kw, kb = jax.random.split(key, 3)
        bound = 1.0 / (fan_in ** 0.5)
        w = jax.random.uniform(kw, (fan_in, fan_out), jnp.float32, -bound, bound)
        b = jax.random.uniform(kb, (fan_out,), jnp.float32, -bound, bound)
        raw.append((w, b))
    return pack_params(raw)


def reference_forward(x, params):
    """Plain-JAX reference with the same numerics as the kernel
    (bf16 weights/activations into the MXU, f32 accumulation)."""
    w1, w2, w3, biases = params
    b1 = biases[0, :H1]
    b2 = biases[1, :H2]
    b3 = biases[2, :NUM_CLASSES]
    h = jnp.dot(x.astype(jnp.bfloat16), w1[:INPUT_SIZE],
                preferred_element_type=jnp.float32) + b1
    h = jnp.maximum(h, 0.0)
    h = jnp.dot(h.astype(jnp.bfloat16), w2,
                preferred_element_type=jnp.float32) + b2
    h = jnp.maximum(h, 0.0)
    return jnp.dot(h.astype(jnp.bfloat16), w3,
                   preferred_element_type=jnp.float32) + b3


if __name__ == "__main__":
    key = jax.random.PRNGKey(0)
    key, kx = jax.random.split(key)

    batch = 8
    x = jax.random.normal(kx, (batch, INPUT_SIZE), jnp.float32)
    params = init_params(key)

    fwd = jax.jit(neural_net_forward)
    out = jax.block_until_ready(fwd(x, params))

    ref = reference_forward(x, params)
    assert out.shape == (batch, NUM_CLASSES), out.shape
    assert jnp.allclose(out, ref, atol=2e-3, rtol=2e-3), "mismatch vs reference"

    print("KERNEL_OK")
</pallas_src>

<mosaic_0001>
module attributes {stable_mosaic.version = 11 : i64} {
  func.func @mlp_kernel(%arg0: i32, %arg1: memref<16x4864xbf16, #tpu.memory_space<vmem>>, %arg2: memref<4864x256xbf16, #tpu.memory_space<vmem>>, %arg3: memref<256x64xbf16, #tpu.memory_space<vmem>>, %arg4: memref<64x2xbf16, #tpu.memory_space<vmem>>, %arg5: memref<3x256xf32, #tpu.memory_space<vmem>>, %arg6: memref<16x2xf32, #tpu.memory_space<vmem>>) attributes {dimension_semantics = [#tpu.dimension_semantics<parallel>], iteration_bounds = array<i64: 1>, scalar_prefetch = 0 : i64, scratch_operands = 0 : i64, tpu.core_type = #tpu.core_type<tc>, window_params = [{transform_indices = @transform_0, window_bounds = array<i64: 16, 4864>}, {pipeline_mode = #tpu.pipeline_mode<synchronous>, transform_indices = @transform_1, window_bounds = array<i64: 4864, 256>}, {pipeline_mode = #tpu.pipeline_mode<synchronous>, transform_indices = @transform_2, window_bounds = array<i64: 256, 64>}, {pipeline_mode = #tpu.pipeline_mode<synchronous>, transform_indices = @transform_3, window_bounds = array<i64: 64, 2>}, {pipeline_mode = #tpu.pipeline_mode<synchronous>, transform_indices = @transform_4, window_bounds = array<i64: 3, 256>}, {transform_indices = @transform_5, window_bounds = array<i64: 16, 2>}]} {
    %c0 = arith.constant 0 : index
    %c0_0 = arith.constant 0 : index
    %0 = vector.load %arg5[%c0, %c0_0] : memref<3x256xf32, #tpu.memory_space<vmem>>, vector<1x256xf32>
    %c1 = arith.constant 1 : index
    %c0_1 = arith.constant 0 : index
    %1 = vector.load %arg5[%c1, %c0_1] : memref<3x256xf32, #tpu.memory_space<vmem>>, vector<1x64xf32>
    %c2 = arith.constant 2 : index
    %c0_2 = arith.constant 0 : index
    %2 = vector.load %arg5[%c2, %c0_2] : memref<3x256xf32, #tpu.memory_space<vmem>>, vector<1x2xf32>
    %c0_3 = arith.constant 0 : index
    %c0_4 = arith.constant 0 : index
    %3 = vector.load %arg1[%c0_3, %c0_4] : memref<16x4864xbf16, #tpu.memory_space<vmem>>, vector<16x4864xbf16>
    %c0_5 = arith.constant 0 : index
    %c0_6 = arith.constant 0 : index
    %4 = vector.load %arg2[%c0_5, %c0_6] : memref<4864x256xbf16, #tpu.memory_space<vmem>>, vector<4864x256xbf16>
    %cst = arith.constant dense<0.000000e+00> : vector<16x256xf32>
    %5 = tpu.matmul %3, %4, %cst {dimension_numbers = #tpu.dot_dimension_numbers<[1], [0], [0], [1], [0, 0, 1, 1], [], []>} : vector<16x4864xbf16>, vector<4864x256xbf16>, vector<16x256xf32> -> vector<16x256xf32>
    %6 = vector.broadcast %0 : vector<1x256xf32> to vector<16x256xf32>
    %7 = arith.addf %5, %6 : vector<16x256xf32>
    %cst_7 = arith.constant 0.000000e+00 : f32
    %8 = vector.broadcast %cst_7 : f32 to vector<16x256xf32>
    %9 = arith.maximumf %7, %8 : vector<16x256xf32>
    %10 = arith.truncf %9 : vector<16x256xf32> to vector<16x256xbf16>
    %c0_8 = arith.constant 0 : index
    %c0_9 = arith.constant 0 : index
    %11 = vector.load %arg3[%c0_8, %c0_9] : memref<256x64xbf16, #tpu.memory_space<vmem>>, vector<256x64xbf16>
    %cst_10 = arith.constant dense<0.000000e+00> : vector<16x64xf32>
    %12 = tpu.matmul %10, %11, %cst_10 {dimension_numbers = #tpu.dot_dimension_numbers<[1], [0], [0], [1], [0, 0, 1, 1], [], []>} : vector<16x256xbf16>, vector<256x64xbf16>, vector<16x64xf32> -> vector<16x64xf32>
    %13 = vector.broadcast %1 : vector<1x64xf32> to vector<16x64xf32>
    %14 = arith.addf %12, %13 : vector<16x64xf32>
    %cst_11 = arith.constant 0.000000e+00 : f32
    %15 = vector.broadcast %cst_11 : f32 to vector<16x64xf32>
    %16 = arith.maximumf %14, %15 : vector<16x64xf32>
    %17 = arith.truncf %16 : vector<16x64xf32> to vector<16x64xbf16>
    %c0_12 = arith.constant 0 : index
    %c0_13 = arith.constant 0 : index
    %18 = vector.load %arg4[%c0_12, %c0_13] : memref<64x2xbf16, #tpu.memory_space<vmem>>, vector<64x2xbf16>
    %cst_14 = arith.constant dense<0.000000e+00> : vector<16x2xf32>
    %19 = tpu.matmul %17, %18, %cst_14 {dimension_numbers = #tpu.dot_dimension_numbers<[1], [0], [0], [1], [0, 0, 1, 1], [], []>} : vector<16x64xbf16>, vector<64x2xbf16>, vector<16x2xf32> -> vector<16x2xf32>
    %20 = vector.broadcast %2 : vector<1x2xf32> to vector<16x2xf32>
    %21 = arith.addf %19, %20 : vector<16x2xf32>
    %c0_15 = arith.constant 0 : index
    %c0_16 = arith.constant 0 : index
    %22 = vector.load %arg6[%c0_15, %c0_16] : memref<16x2xf32, #tpu.memory_space<vmem>>, vector<16x2xf32>
    tpu.vector_store %arg6[%c0_15, %c0_16], %21 {strides = array<i32>} : memref<16x2xf32, #tpu.memory_space<vmem>>, vector<16x2xf32>,
    return
  }
  func.func @transform_0(%arg0: i32) -> (i32, i32) {
    %c0_i32 = arith.constant 0 : i32
    %c0_i32_0 = arith.constant 0 : i32
    return %arg0, %c0_i32 : i32, i32
  }
  func.func @transform_1(%arg0: i32) -> (i32, i32) {
    %c0_i32 = arith.constant 0 : i32
    %c0_i32_0 = arith.constant 0 : i32
    %c0_i32_1 = arith.constant 0 : i32
    return %c0_i32, %c0_i32_0 : i32, i32
  }
  func.func @transform_2(%arg0: i32) -> (i32, i32) {
    %c0_i32 = arith.constant 0 : i32
    %c0_i32_0 = arith.constant 0 : i32
    %c0_i32_1 = arith.constant 0 : i32
    return %c0_i32, %c0_i32_0 : i32, i32
  }
  func.func @transform_3(%arg0: i32) -> (i32, i32) {
    %c0_i32 = arith.constant 0 : i32
    %c0_i32_0 = arith.constant 0 : i32
    %c0_i32_1 = arith.constant 0 : i32
    return %c0_i32, %c0_i32_0 : i32, i32
  }
  func.func @transform_4(%arg0: i32) -> (i32, i32) {
    %c0_i32 = arith.constant 0 : i32
    %c0_i32_0 = arith.constant 0 : i32
    %c0_i32_1 = arith.constant 0 : i32
    return %c0_i32, %c0_i32_0 : i32, i32
  }
  func.func @transform_5(%arg0: i32) -> (i32, i32) {
    %c0_i32 = arith.constant 0 : i32
    %c0_i32_0 = arith.constant 0 : i32
    return %arg0, %c0_i32 : i32, i32
  }
}

</mosaic_0001>

<bundles_post_ra>
// kernel: neural_net_forward.1
= control target key start
LH: loop header
LB: loop body
LE: loop exit
PB: predicated region body
PF: predicated region fallthrough
CT: control target
= control target key end

     0   :  { %10 = vsyncpa [#allocation3], 0  ;;  %s7042_s0 = inlined_call_operand.vmem [shape: bf16[16,4864], index: 0, kind: input, shape index: {}]   ;;  %s7043_s1 = inlined_call_operand.hbm [shape: bf16[4864,256], index: 1, kind: input, shape index: {}]   ;;  %s7044_s2 = inlined_call_operand.vmem [shape: bf16[256,64], index: 2, kind: input, shape index: {}]   ;;  %s7045_s3 = inlined_call_operand.vmem [shape: bf16[64,2], index: 3, kind: input, shape index: {}]   ;;  %s7046_s4 = inlined_call_operand.hbm [shape: f32[3,256], index: 4, kind: input, shape index: {}]   ;;  %s7047_s5 = inlined_call_operand.vmem [shape: f32[16,2], index: 5, kind: output, shape index: {}]  }
   0x1   :  { %11 = vsyncpa [#allocation5], 0  ;;  %s6773_s18 = smov [#allocation2]  }
   0x2   :  { %s19_s19 = sshll.u32 %s6773_s18, 4  ;;  %s20_s19 = int_to_ptr.vmem [resolvable:$true] %s19_s19 }
   0x3   :  { %s6737_s20 = scalar_lea.vmem %s20_s19, 77824  ;;  %p6742_p1 = scmp.lt.s32.totalorder %s20_s19, %s20_s19 }
   0x4   :  { %p6738_p0 = scmp.ne.s32.totalorder %s20_s19, %s6737_s20  ;;  %p6743_p2 = scmp.lt.s32.totalorder %s6737_s20, %s6737_s20 }
   0x6   :  { %p6744_p3 = por %p6743_p2, %p6742_p1 }
   0x8   :  { %p6745_p4 = pnand %p6744_p3, %p6738_p0 }
   0xa   :  { %6748 = shalt.err (!%p6745_p4)
}
   0xb   :  { %s6774_s21 = smov 128   ;;  %s6775_s22 = smov 8  }
   0xc   :  { %25 = dma.hbm_to_vmem [thread:$0]  %s7043_s1, 77824, %s20_s19, [#allocation3], %s6774_s21, %s6774_s21, %s6775_s22  }
   0xd   :  { %s6776_s25 = smov [#allocation4]  }
   0xe   :  { %s36_s26 = sshll.u32 %s6776_s25, 4  ;;  %s37_s26 = int_to_ptr.vmem [resolvable:$true] %s36_s26 }
   0xf   :  { %s6757_s27 = scalar_lea.vmem %s37_s26, 128  ;;  %p6762_p6 = scmp.lt.s32.totalorder %s37_s26, %s37_s26 }
  0x10   :  { %p6758_p5 = scmp.ne.s32.totalorder %s37_s26, %s6757_s27  ;;  %p6763_p7 = scmp.lt.s32.totalorder %s6757_s27, %s6757_s27 }
  0x12   :  { %p6764_p8 = por %p6763_p7, %p6762_p6 }
  0x14   :  { %p6765_p9 = pnand %p6764_p8, %p6758_p5 }
  0x16   :  { %6768 = shalt.err (!%p6765_p9)
}
  0x17   :  { %39 = dma.hbm_to_vmem [thread:$0]  %s7046_s4, 128, %s37_s26, [#allocation5]  }
  0x18   :  { %6769 = dma.done.wait [#allocation3], 77824  }
  0x19   :  { %6770 = vsyncadd [#allocation3], 4294889472 }
  0x1a   :  { %6771 = dma.done.wait [#allocation5], 128  }
  0x1b   :  { %6772 = vsyncadd [#allocation5], 4294967168  ;;  %v5740_v0 = vld [vmem:[#allocation2 + $0x74] ss:$8 sps:$4 sm:$0xff]   ;;  %v5742_v1 = vld [vmem:[#allocation2 + $0x70] ss:$8 sps:$4 sm:$0xff]  }
  0x1c   :  { %3937 = vmatprep.subr.bf16.mxu0 %v5740_v0  ;;  %v5743_v2 = vld [vmem:[#allocation2 + $0x174] ss:$8 sps:$4 sm:$0xff]   ;;  %v5745_v3 = vld [vmem:[#allocation2 + $0x170] ss:$8 sps:$4 sm:$0xff]   ;;  %v5746_v4 = vld [vmem:[#allocation2 + $0x64] ss:$8 sps:$4 sm:$0xff]  }
  0x1d   :  { %3938 = vmatpush1.bf16.msra.mxu0 %v5742_v1  ;;  %v5748_v5 = vld [vmem:[#allocation2 + $0x60] ss:$8 sps:$4 sm:$0xff]   ;;  %3980 = vmatprep.subr.bf16.mxu1 %v5743_v2  ;;  %v5749_v6 = vld [vmem:[#allocation2 + $0x164] ss:$8 sps:$4 sm:$0xff]   ;;  %v5752_v8 = vld [vmem:[#allocation2 + $0x54] ss:$8 sps:$4 sm:$0xff]  }
  0x1e   :  { %3981 = vmatpush1.bf16.msra.mxu1 %v5745_v3  ;;  %3939 = vmatprep.subr.bf16.mxu0 %v5746_v4  ;;  %v5751_v7 = vld [vmem:[#allocation2 + $0x160] ss:$8 sps:$4 sm:$0xff]   ;;  %v5754_v9 = vld [vmem:[#allocation2 + $0x50] ss:$8 sps:$4 sm:$0xff]   ;;  %v5755_v10 = vld [vmem:[#allocation2 + $0x154] ss:$8 sps:$4 sm:$0xff]  }
  0x1f   :  { %3982 = vmatprep.subr.bf16.mxu1 %v5749_v6  ;;  %v5758_v11 = vld [vmem:[#allocation2 + $0x44] ss:$8 sps:$4 sm:$0xff]   ;;  %v5757_v12 = vld [vmem:[#allocation2 + $0x150] ss:$8 sps:$4 sm:$0xff]   ;;  %v5760_v14 = vld [vmem:[#allocation2 + $0x40] ss:$8 sps:$4 sm:$0xff]  }
  0x20   :  { %v5761_v13 = vld [vmem:[#allocation2 + $0x144] ss:$8 sps:$4 sm:$0xff]   ;;  %v5764_v15 = vld [vmem:[#allocation2 + $0x34] ss:$8 sps:$4 sm:$0xff]   ;;  %v5763_v16 = vld [vmem:[#allocation2 + $0x140] ss:$8 sps:$4 sm:$0xff]  }
  0x21   :  { %3940 = vmatpush1.bf16.msra.mxu0 %v5748_v5  ;;  %v5767_v17 = vld [vmem:[#allocation2 + $0x134] ss:$8 sps:$4 sm:$0xff]   ;;  %v5766_v18 = vld [vmem:[#allocation2 + $0x30] ss:$8 sps:$4 sm:$0xff]   ;;  %v5770_v19 = vld [vmem:[#allocation2 + $0x24] ss:$8 sps:$4 sm:$0xff]  }
  0x22   :  { %3941 = vmatprep.subr.bf16.mxu0 %v5752_v8  ;;  %3983 = vmatpush1.bf16.msra.mxu1 %v5751_v7  ;;  %v5769_v20 = vld [vmem:[#allocation2 + $0x130] ss:$8 sps:$4 sm:$0xff]   ;;  %v5773_v21 = vld [vmem:[#allocation2 + $0x124] ss:$8 sps:$4 sm:$0xff]   ;;  %v5772_v22 = vld [vmem:[#allocation2 + $0x20] ss:$8 sps:$4 sm:$0xff]  }
  0x23   :  { %3984 = vmatprep.subr.bf16.mxu1 %v5755_v10  ;;  %v5776_v23 = vld [vmem:[#allocation2 + $0x14] ss:$8 sps:$4 sm:$0xff]   ;;  %v5775_v24 = vld [vmem:[#allocation2 + $0x120] ss:$8 sps:$4 sm:$0xff]   ;;  %v5778_v26 = vld [vmem:[#allocation2 + $0x10] ss:$8 sps:$4 sm:$0xff]  }
  0x24   :  { %v5779_v25 = vld [vmem:[#allocation2 + $0x114] ss:$8 sps:$4 sm:$0xff]   ;;  %v5782_v27 = vld [vmem:[#allocation2 + $0x4] ss:$8 sps:$4 sm:$0xff]   ;;  %v5781_v28 = vld [vmem:[#allocation2 + $0x110] ss:$8 sps:$4 sm:$0xff]  }
  0x25   :  { %3942 = vmatpush1.bf16.msra.mxu0 %v5754_v9  ;;  %v5785_v29 = vld [vmem:[#allocation2 + $0x104] ss:$8 sps:$4 sm:$0xff]   ;;  %v5784_v30 = vld [vmem:[#allocation2] ss:$8 sps:$4 sm:$0xff]   ;;  %v5788_v31 = vld [vmem:[#allocation2 + $0xf4] ss:$8 sps:$4 sm:$0xff]  }
  0x26   :  { %3943 = vmatprep.subr.bf16.mxu0 %v5758_v11  ;;  %3985 = vmatpush1.bf16.msra.mxu1 %v5757_v12  ;;  %v5787_v32 = vld [vmem:[#allocation2 + $0x100] ss:$8 sps:$4 sm:$0xff]   ;;  %v5791_v33 = vld [vmem:[#allocation2 + $0x1f4] ss:$8 sps:$4 sm:$0xff]   ;;  %v5790_v34 = vld [vmem:[#allocation2 + $0xf0] ss:$8 sps:$4 sm:$0xff]  }
  0x27   :  { %3986 = vmatprep.subr.bf16.mxu1 %v5761_v13  ;;  %v5794_v35 = vld [vmem:[#allocation2 + $0xe4] ss:$8 sps:$4 sm:$0xff]   ;;  %v5793_v36 = vld [vmem:[#allocation2 + $0x1f0] ss:$8 sps:$4 sm:$0xff]   ;;  %v5796_v38 = vld [vmem:[#allocation2 + $0xe0] ss:$8 sps:$4 sm:$0xff]  }
  0x28   :  { %v5797_v37 = vld [vmem:[#allocation2 + $0x1e4] ss:$8 sps:$4 sm:$0xff]   ;;  %v5800_v39 = vld [vmem:[#allocation2 + $0xd4] ss:$8 sps:$4 sm:$0xff]   ;;  %v5799_v40 = vld [vmem:[#allocation2 + $0x1e0] ss:$8 sps:$4 sm:$0xff]  }
  0x29   :  { %3944 = vmatpush1.bf16.msra.mxu0 %v5760_v14  ;;  %v5803_v41 = vld [vmem:[#allocation2 + $0x1d4] ss:$8 sps:$4 sm:$0xff]   ;;  %v5802_v42 = vld [vmem:[#allocation2 + $0xd0] ss:$8 sps:$4 sm:$0xff]   ;;  %v5806_v43 = vld [vmem:[#allocation2 + $0xc4] ss:$8 sps:$4 sm:$0xff]  }
  0x2a   :  { %3945 = vmatprep.subr.bf16.mxu0 %v5764_v15  ;;  %3987 = vmatpush1.bf16.msra.mxu1 %v5763_v16  ;;  %v5805_v44 = vld [vmem:[#allocation2 + $0x1d0] ss:$8 sps:$4 sm:$0xff]   ;;  %v5809_v45 = vld [vmem:[#allocation2 + $0x1c4] ss:$8 sps:$4 sm:$0xff]   ;;  %v5808_v46 = vld [vmem:[#allocation2 + $0xc0] ss:$8 sps:$4 sm:$0xff]  }
  0x2b   :  { %3988 = vmatprep.subr.bf16.mxu1 %v5767_v17  ;;  %v5837_v47 = vld [vmem:[%s7042_s0 + $0x4] ss:$152 sps:$4 sm:$0xff]   ;;  %v5811_v49 = vld [vmem:[#allocation2 + $0x1c0] ss:$8 sps:$4 sm:$0xff]   ;;  %v5814_v52 = vld [vmem:[#allocation2 + $0xb0] ss:$8 sps:$4 sm:$0xff]  }
  0x2c   :  { %v5812_v48 = vld [vmem:[#allocation2 + $0xb4] ss:$8 sps:$4 sm:$0xff]   ;;  %3969 = vmatprep.mubr.bf16.mxu0 %v5837_v47  ;;  %v5844_v51 = vld [vmem:[%s7042_s0 + $0xc] ss:$152 sps:$4 sm:$0xff]   ;;  %v5817_v54 = vld [vmem:[#allocation2 + $0x1b0] ss:$8 sps:$4 sm:$0xff]  }
  0x2d   :  { %3946 = vmatpush1.bf16.msra.mxu0 %v5766_v18  ;;  %v5815_v50 = vld [vmem:[#allocation2 + $0x1b4] ss:$8 sps:$4 sm:$0xff]   ;;  %v5818_v53 = vld [vmem:[#allocation2 + $0xa4] ss:$8 sps:$4 sm:$0xff]   ;;  %4012 = vmatprep.mubr.bf16.mxu1 %v5844_v51  ;;  %v5820_v56 = vld [vmem:[#allocation2 + $0xa0] ss:$8 sps:$4 sm:$0xff]  }
  0x2e   :  { %3947 = vmatprep.subr.bf16.mxu0 %v5770_v19  ;;  %3989 = vmatpush1.bf16.msra.mxu1 %v5769_v20  ;;  %v5821_v55 = vld [vmem:[#allocation2 + $0x1a4] ss:$8 sps:$4 sm:$0xff]   ;;  %v5824_v57 = vld [vmem:[#allocation2 + $0x94] ss:$8 sps:$4 sm:$0xff]   ;;  %v5823_v58 = vld [vmem:[#allocation2 + $0x1a0] ss:$8 sps:$4 sm:$0xff]  }
  0x2f   :  { %3990 = vmatprep.subr.bf16.mxu1 %v5773_v21  ;;  %v5827_v59 = vld [vmem:[#allocation2 + $0x194] ss:$8 sps:$4 sm:$0xff]   ;;  %v5826_v60 = vld [vmem:[#allocation2 + $0x90] ss:$8 sps:$4 sm:$0xff]   ;;  %v5830_v61 = vld [vmem:[#allocation2 + $0x84] ss:$8 sps:$4 sm:$0xff]  }
  0x30   :  { %v5829_v62 = vld [vmem:[#allocation2 + $0x190] ss:$8 sps:$4 sm:$0xff]   ;;  %v5833_v63 = vld [vmem:[#allocation2 + $0x184] ss:$8 sps:$4 sm:$0xff]   ;;  %v5832_v0 = vld [vmem:[#allocation2 + $0x80] ss:$8 sps:$4 sm:$0xff]  }
  0x31   :  { %3948 = vmatpush1.bf16.msra.mxu0 %v5772_v22  ;;  %v5841_v1 = vld [vmem:[#allocation2 + $0x274] ss:$8 sps:$4 sm:$0xff]   ;;  %v5838_v2 = vld [vmem:[#allocation2 + $0x180] ss:$8 sps:$4 sm:$0xff]   ;;  %v5839_v5 = vld [vmem:[#allocation2 + $0x270] ss:$8 sps:$4 sm:$0xff]  }
  0x32   :  { %3949 = vmatprep.subr.bf16.mxu0 %v5776_v23  ;;  %3991 = vmatpush1.bf16.msra.mxu1 %v5775_v24  ;;  %v5835_v3 = vld [vmem:[%s7042_s0] ss:$152 sps:$4 sm:$0xff]   ;;  %v5847_v4 = vld [vmem:[#allocation2 + $0x374] ss:$8 sps:$4 sm:$0xff]   ;;  %v5850_v7 = vld [vmem:[#allocation2 + $0x264] ss:$8 sps:$4 sm:$0xff]  }
  0x33   :  { %3992 = vmatprep.subr.bf16.mxu1 %v5779_v25  ;;  %v5842_v6 = vld [vmem:[%s7042_s0 + $0x8] ss:$152 sps:$4 sm:$0xff]   ;;  %v5845_v8 = vld [vmem:[#allocation2 + $0x370] ss:$8 sps:$4 sm:$0xff]   ;;  %v5853_v9 = vld [vmem:[#allocation2 + $0x364] ss:$8 sps:$4 sm:$0xff]  }
  0x34   :  { %v5848_v10 = vld [vmem:[#allocation2 + $0x260] ss:$8 sps:$4 sm:$0xff]   ;;  %v5856_v11 = vld [vmem:[#allocation2 + $0x254] ss:$8 sps:$4 sm:$0xff]   ;;  %v5854_v14 = vld [vmem:[#allocation2 + $0x250] ss:$8 sps:$4 sm:$0xff]  }
  0x35   :  { %3950 = vmatpush1.bf16.msra.mxu0 %v5778_v26  ;;  %v5851_v12 = vld [vmem:[#allocation2 + $0x360] ss:$8 sps:$4 sm:$0xff]   ;;  %v5859_v13 = vld [vmem:[#allocation2 + $0x354] ss:$8 sps:$4 sm:$0xff]   ;;  %v5862_v15 = vld [vmem:[#allocation2 + $0x244] ss:$8 sps:$4 sm:$0xff]  }
  0x36   :  { %3951 = vmatprep.subr.bf16.mxu0 %v5782_v27  ;;  %3993 = vmatpush1.bf16.msra.mxu1 %v5781_v28  ;;  %v5857_v16 = vld [vmem:[#allocation2 + $0x350] ss:$8 sps:$4 sm:$0xff]   ;;  %v5865_v17 = vld [vmem:[#allocation2 + $0x344] ss:$8 sps:$4 sm:$0xff]   ;;  %v5860_v18 = vld [vmem:[#allocation2 + $0x240] ss:$8 sps:$4 sm:$0xff]  }
  0x37   :  { %3994 = vmatprep.subr.bf16.mxu1 %v5785_v29  ;;  %v5868_v19 = vld [vmem:[#allocation2 + $0x234] ss:$8 sps:$4 sm:$0xff]   ;;  %v5863_v20 = vld [vmem:[#allocation2 + $0x340] ss:$8 sps:$4 sm:$0xff]   ;;  %v5866_v22 = vld [vmem:[#allocation2 + $0x230] ss:$8 sps:$4 sm:$0xff]  }
  0x38   :  { %v5871_v21 = vld [vmem:[#allocation2 + $0x334] ss:$8 sps:$4 sm:$0xff]   ;;  %v5874_v23 = vld [vmem:[#allocation2 + $0x224] ss:$8 sps:$4 sm:$0xff]   ;;  %v5869_v24 = vld [vmem:[#allocation2 + $0x330] ss:$8 sps:$4 sm:$0xff]  }
  0x39   :  { %3952 = vmatpush1.bf16.msra.mxu0 %v5784_v30  ;;  %v5877_v25 = vld [vmem:[#allocation2 + $0x324] ss:$8 sps:$4 sm:$0xff]   ;;  %v5872_v26 = vld [vmem:[#allocation2 + $0x220] ss:$8 sps:$4 sm:$0xff]   ;;  %v5880_v27 = vld [vmem:[#allocation2 + $0x214] ss:$8 sps:$4 sm:$0xff]  }
  0x3a   :  { %3953 = vmatprep.subr.bf16.mxu0 %v5788_v31  ;;  %3995 = vmatpush1.bf16.msra.mxu1 %v5787_v32  ;;  %v5875_v28 = vld [vmem:[#allocation2 + $0x320] ss:$8 sps:$4 sm:$0xff]   ;;  %v5883_v29 = vld [vmem:[#allocation2 + $0x314] ss:$8 sps:$4 sm:$0xff]   ;;  %v5878_v30 = vld [vmem:[#allocation2 + $0x210] ss:$8 sps:$4 sm:$0xff]  }
  0x3b   :  { %3996 = vmatprep.subr.bf16.mxu1 %v5791_v33  ;;  %v5881_v31 = vld [vmem:[#allocation2 + $0x310] ss:$8 sps:$4 sm:$0xff]   ;;  %v5886_v32 = vld [vmem:[#allocation2 + $0x204] ss:$8 sps:$4 sm:$0xff]   ;;  %v5907_v47 = vld [vmem:[#allocation2 + $0x3d4] ss:$8 sps:$4 sm:$0xff]  }
  0x3c   :  { %v5940_v33 = vld [vmem:[%s7042_s0 + $0x14] ss:$152 sps:$4 sm:$0xff]   ;;  %vm6778_vm0 = vmmov 0   ;;  %vm4972_vm1 = vcmask 523264   ;;  %vm5017_vm2 = vcmask 15360  }
  0x3d   :  { %3954 = vmatpush2.bf16.msra.mxu0 %v5790_v34  ;;  %v5889_v34 = vld [vmem:[#allocation2 + $0x304] ss:$8 sps:$4 sm:$0xff]  }
  0x3e   :  { %3955 = vmatprep.subr.bf16.mxu0 %v5794_v35  ;;  %3997 = vmatpush2.bf16.msra.mxu1 %v5793_v36  ;;  %v5884_v35 = vld [vmem:[#allocation2 + $0x200] ss:$8 sps:$4 sm:$0xff]   ;;  %v5946_v36 = vld [vmem:[%s7042_s0 + $0x1c] ss:$152 sps:$4 sm:$0xff]   ;;  %v5913_v51 = vld [vmem:[#allocation2 + $0x3c4] ss:$8 sps:$4 sm:$0xff]  }
  0x3f   :  { %3998 = vmatprep.subr.bf16.mxu1 %v5797_v37  ;;  %v5892_v37 = vld [vmem:[#allocation2 + $0x2f4] ss:$8 sps:$4 sm:$0xff]  }
  0x41   :  { %3956 = vmatpush2.bf16.msra.mxu0 %v5796_v38  ;;  %v5887_v38 = vld [vmem:[#allocation2 + $0x300] ss:$8 sps:$4 sm:$0xff]  }
  0x42   :  { %3957 = vmatprep.subr.bf16.mxu0 %v5800_v39  ;;  %3999 = vmatpush2.bf16.msra.mxu1 %v5799_v40  ;;  %v5895_v39 = vld [vmem:[#allocation2 + $0x3f4] ss:$8 sps:$4 sm:$0xff]   ;;  %v5890_v40 = vld [vmem:[#allocation2 + $0x2f0] ss:$8 sps:$4 sm:$0xff]  }
  0x43   :  { %4000 = vmatprep.subr.bf16.mxu1 %v5803_v41  ;;  %v5898_v41 = vld [vmem:[#allocation2 + $0x2e4] ss:$8 sps:$4 sm:$0xff]  }
  0x45   :  { %3958 = vmatpush2.bf16.msra.mxu0 %v5802_v42  ;;  %v5893_v42 = vld [vmem:[#allocation2 + $0x3f0] ss:$8 sps:$4 sm:$0xff]  }
  0x46   :  { %3959 = vmatprep.subr.bf16.mxu0 %v5806_v43  ;;  %4001 = vmatpush2.bf16.msra.mxu1 %v5805_v44  ;;  %v5901_v43 = vld [vmem:[#allocation2 + $0x3e4] ss:$8 sps:$4 sm:$0xff]   ;;  %v5896_v44 = vld [vmem:[#allocation2 + $0x2e0] ss:$8 sps:$4 sm:$0xff]  }
  0x47   :  { %4002 = vmatprep.subr.bf16.mxu1 %v5809_v45  ;;  %v5904_v45 = vld [vmem:[#allocation2 + $0x2d4] ss:$8 sps:$4 sm:$0xff]  }
  0x49   :  { %3960 = vmatpush2.bf16.msra.mxu0 %v5808_v46  ;;  %v5899_v46 = vld [vmem:[#allocation2 + $0x3e0] ss:$8 sps:$4 sm:$0xff]  }
  0x4a   :  { %3961 = vmatprep.subr.bf16.mxu0 %v5812_v48  ;;  %4003 = vmatpush2.bf16.msra.mxu1 %v5811_v49  ;;  %v5902_v48 = vld [vmem:[#allocation2 + $0x2d0] ss:$8 sps:$4 sm:$0xff]   ;;  %v5910_v49 = vld [vmem:[#allocation2 + $0x2c4] ss:$8 sps:$4 sm:$0xff]  }
  0x4b   :  { %4004 = vmatprep.subr.bf16.mxu1 %v5815_v50  ;;  %v5905_v50 = vld [vmem:[#allocation2 + $0x3d0] ss:$8 sps:$4 sm:$0xff]  }
  0x4d   :  { %3962 = vmatpush2.bf16.msra.mxu0 %v5814_v52  ;;  %v5908_v52 = vld [vmem:[#allocation2 + $0x2c0] ss:$8 sps:$4 sm:$0xff]  }
  0x4e   :  { %3963 = vmatprep.subr.bf16.mxu0 %v5818_v53  ;;  %4005 = vmatpush2.bf16.msra.mxu1 %v5817_v54  ;;  %v5916_v53 = vld [vmem:[#allocation2 + $0x2b4] ss:$8 sps:$4 sm:$0xff]   ;;  %v5911_v54 = vld [vmem:[#allocation2 + $0x3c0] ss:$8 sps:$4 sm:$0xff]  }
  0x4f   :  { %4006 = vmatprep.subr.bf16.mxu1 %v5821_v55  ;;  %v5919_v55 = vld [vmem:[#allocation2 + $0x3b4] ss:$8 sps:$4 sm:$0xff]  }
  0x51   :  { %3964 = vmatpush2.bf16.msra.mxu0 %v5820_v56  ;;  %v5914_v56 = vld [vmem:[#allocation2 + $0x2b0] ss:$8 sps:$4 sm:$0xff]  }
  0x52   :  { %3965 = vmatprep.subr.bf16.mxu0 %v5824_v57  ;;  %4007 = vmatpush2.bf16.msra.mxu1 %v5823_v58  ;;  %v5922_v57 = vld [vmem:[#allocation2 + $0x2a4] ss:$8 sps:$4 sm:$0xff]   ;;  %v5917_v58 = vld [vmem:[#allocation2 + $0x3b0] ss:$8 sps:$4 sm:$0xff]  }
  0x53   :  { %4008 = vmatprep.subr.bf16.mxu1 %v5827_v59  ;;  %v5925_v59 = vld [vmem:[#allocation2 + $0x3a4] ss:$8 sps:$4 sm:$0xff]  }
  0x55   :  { %3966 = vmatpush2.bf16.msra.mxu0 %v5826_v60  ;;  %v5920_v60 = vld [vmem:[#allocation2 + $0x2a0] ss:$8 sps:$4 sm:$0xff]  }
  0x56   :  { %3967 = vmatprep.subr.bf16.mxu0 %v5830_v61  ;;  %4009 = vmatpush2.bf16.msra.mxu1 %v5829_v62  ;;  %v5928_v61 = vld [vmem:[#allocation2 + $0x294] ss:$8 sps:$4 sm:$0xff]   ;;  %v5923_v62 = vld [vmem:[#allocation2 + $0x3a0] ss:$8 sps:$4 sm:$0xff]  }
  0x57   :  { %4010 = vmatprep.subr.bf16.mxu1 %v5833_v63  ;;  %v5931_v63 = vld [vmem:[#allocation2 + $0x394] ss:$8 sps:$4 sm:$0xff]  }
  0x59   :  { %3968 = vmatpush2.bf16.msra.mxu0 %v5832_v0  ;;  %v5926_v0 = vld [vmem:[#allocation2 + $0x290] ss:$8 sps:$4 sm:$0xff]  }
  0x5a   :  { %4023 = vmatprep.subr.bf16.mxu0 %v5841_v1  ;;  %4011 = vmatpush2.bf16.msra.mxu1 %v5838_v2  ;;  %v5934_v1 = vld [vmem:[#allocation2 + $0x284] ss:$8 sps:$4 sm:$0xff]   ;;  %v5929_v2 = vld [vmem:[#allocation2 + $0x390] ss:$8 sps:$4 sm:$0xff]  }
  0x5b   :  { %4066 = vmatprep.subr.bf16.mxu1 %v5847_v4  ;;  %v5932_v4 = vld [vmem:[#allocation2 + $0x280] ss:$8 sps:$4 sm:$0xff]  }
  0x5c   :  { %3970 = vmatmul.mubr.bf16.vlgmr.msra.gmra.mxu0 %v5835_v3  ;;  %v5937_v3 = vld [vmem:[#allocation2 + $0x384] ss:$8 sps:$4 sm:$0xff]  }
  0x5d   :  { %4024 = vmatpush1.bf16.msra.mxu0 %v5839_v5  ;;  %4013 = vmatmul.mubr.bf16.vlgmr.msra.gmra.mxu1 %v5842_v6  ;;  %v5943_v5 = vld [vmem:[#allocation2 + $0x474] ss:$8 sps:$4 sm:$0xff]   ;;  %v5935_v6 = vld [vmem:[#allocation2 + $0x380] ss:$8 sps:$4 sm:$0xff]  }
  0x5e   :  { %4025 = vmatprep.subr.bf16.mxu0 %v5850_v7  ;;  %4067 = vmatpush1.bf16.msra.mxu1 %v5845_v8  ;;  %v5938_v7 = vld [vmem:[%s7042_s0 + $0x10] ss:$152 sps:$4 sm:$0xff]   ;;  %v5949_v8 = vld [vmem:[#allocation2 + $0x574] ss:$8 sps:$4 sm:$0xff]  }
  0x5f   :  { %4068 = vmatprep.subr.bf16.mxu1 %v5853_v9  ;;  %4055 = vmatprep.mubr.bf16.mxu0 %v5940_v33  ;;  %v5941_v9 = vld [vmem:[#allocation2 + $0x470] ss:$8 sps:$4 sm:$0xff]   ;;  %v5982_v33 = vld [vmem:[#allocation2 + $0x414] ss:$8 sps:$4 sm:$0xff]  }
  0x60   :  { %4098 = vmatprep.mubr.bf16.mxu1 %v5946_v36  ;;  %v5980_v36 = vld [vmem:[#allocation2 + $0x410] ss:$8 sps:$4 sm:$0xff]  }
  0x61   :  { %4026 = vmatpush1.bf16.msra.mxu0 %v5848_v10  ;;  %v5944_v10 = vld [vmem:[%s7042_s0 + $0x18] ss:$152 sps:$4 sm:$0xff]  }
  0x62   :  { %4027 = vmatprep.subr.bf16.mxu0 %v5856_v11  ;;  %4069 = vmatpush1.bf16.msra.mxu1 %v5851_v12  ;;  %v5952_v11 = vld [vmem:[#allocation2 + $0x464] ss:$8 sps:$4 sm:$0xff]   ;;  %v5947_v12 = vld [vmem:[#allocation2 + $0x570] ss:$8 sps:$4 sm:$0xff]  }
  0x63   :  { %4070 = vmatprep.subr.bf16.mxu1 %v5859_v13  ;;  %v5955_v13 = vld [vmem:[#allocation2 + $0x564] ss:$8 sps:$4 sm:$0xff]  }
  0x65   :  { %4028 = vmatpush1.bf16.msra.mxu0 %v5854_v14  ;;  %v5950_v14 = vld [vmem:[#allocation2 + $0x460] ss:$8 sps:$4 sm:$0xff]  }
  0x66   :  { %4029 = vmatprep.subr.bf16.mxu0 %v5862_v15  ;;  %4071 = vmatpush1.bf16.msra.mxu1 %v5857_v16  ;;  %v5958_v15 = vld [vmem:[#allocation2 + $0x454] ss:$8 sps:$4 sm:$0xff]   ;;  %v5953_v16 = vld [vmem:[#allocation2 + $0x560] ss:$8 sps:$4 sm:$0xff]  }
  0x67   :  { %4072 = vmatprep.subr.bf16.mxu1 %v5865_v17  ;;  %v5961_v17 = vld [vmem:[#allocation2 + $0x554] ss:$8 sps:$4 sm:$0xff]  }
  0x69   :  { %4030 = vmatpush1.bf16.msra.mxu0 %v5860_v18  ;;  %v6042_v18 = vld [vmem:[%s7042_s0 + $0x24] ss:$152 sps:$4 sm:$0xff]  }
  0x6a   :  { %4031 = vmatprep.subr.bf16.mxu0 %v5868_v19  ;;  %4073 = vmatpush1.bf16.msra.mxu1 %v5863_v20  ;;  %v5956_v19 = vld [vmem:[#allocation2 + $0x450] ss:$8 sps:$4 sm:$0xff]  }
  0x6b   :  { %4074 = vmatprep.subr.bf16.mxu1 %v5871_v21  ;;  %v5959_v20 = vld [vmem:[#allocation2 + $0x550] ss:$8 sps:$4 sm:$0xff]   ;;  %v5964_v21 = vld [vmem:[#allocation2 + $0x444] ss:$8 sps:$4 sm:$0xff]  }
  0x6d   :  { %4032 = vmatpush1.bf16.msra.mxu0 %v5866_v22  ;;  %v6048_v22 = vld [vmem:[%s7042_s0 + $0x2c] ss:$152 sps:$4 sm:$0xff]  }
  0x6e   :  { %4033 = vmatprep.subr.bf16.mxu0 %v5874_v23  ;;  %4075 = vmatpush1.bf16.msra.mxu1 %v5869_v24  ;;  %v5967_v23 = vld [vmem:[#allocation2 + $0x544] ss:$8 sps:$4 sm:$0xff]   ;;  %v5962_v24 = vld [vmem:[#allocation2 + $0x440] ss:$8 sps:$4 sm:$0xff]  }
  0x6f   :  { %4076 = vmatprep.subr.bf16.mxu1 %v5877_v25  ;;  %v5970_v25 = vld [vmem:[#allocation2 + $0x434] ss:$8 sps:$4 sm:$0xff]  }
  0x71   :  { %4034 = vmatpush1.bf16.msra.mxu0 %v5872_v26  ;;  %v5965_v26 = vld [vmem:[#allocation2 + $0x540] ss:$8 sps:$4 sm:$0xff]  }
  0x72   :  { %4035 = vmatprep.subr.bf16.mxu0 %v5880_v27  ;;  %4077 = vmatpush1.bf16.msra.mxu1 %v5875_v28  ;;  %v5973_v27 = vld [vmem:[#allocation2 + $0x534] ss:$8 sps:$4 sm:$0xff]   ;;  %v5968_v28 = vld [vmem:[#allocation2 + $0x430] ss:$8 sps:$4 sm:$0xff]  }
  0x73   :  { %4078 = vmatprep.subr.bf16.mxu1 %v5883_v29  ;;  %v5976_v29 = vld [vmem:[#allocation2 + $0x424] ss:$8 sps:$4 sm:$0xff]  }
  0x75   :  { %4036 = vmatpush1.bf16.msra.mxu0 %v5878_v30  ;;  %v5971_v30 = vld [vmem:[#allocation2 + $0x530] ss:$8 sps:$4 sm:$0xff]  }
  0x76   :  { %4037 = vmatprep.subr.bf16.mxu0 %v5886_v32  ;;  %4079 = vmatpush1.bf16.msra.mxu1 %v5881_v31  ;;  %v5979_v31 = vld [vmem:[#allocation2 + $0x524] ss:$8 sps:$4 sm:$0xff]   ;;  %v5974_v32 = vld [vmem:[#allocation2 + $0x420] ss:$8 sps:$4 sm:$0xff]  }
  0x77   :  { %4080 = vmatprep.subr.bf16.mxu1 %v5889_v34  ;;  %v5977_v34 = vld [vmem:[#allocation2 + $0x520] ss:$8 sps:$4 sm:$0xff]  }
  0x79   :  { %4038 = vmatpush1.bf16.msra.mxu0 %v5884_v35  ;;  %v5985_v35 = vld [vmem:[#allocation2 + $0x514] ss:$8 sps:$4 sm:$0xff]  }
  0x7a   :  { %4039 = vmatprep.subr.bf16.mxu0 %v5892_v37  ;;  %4081 = vmatpush1.bf16.msra.mxu1 %v5887_v38  ;;  %v5988_v37 = vld [vmem:[#allocation2 + $0x404] ss:$8 sps:$4 sm:$0xff]   ;;  %v5983_v38 = vld [vmem:[#allocation2 + $0x510] ss:$8 sps:$4 sm:$0xff]  }
  0x7b   :  { %4082 = vmatprep.subr.bf16.mxu1 %v5895_v39  ;;  %v5991_v39 = vld [vmem:[#allocation2 + $0x504] ss:$8 sps:$4 sm:$0xff]  }
  0x7d   :  { %4040 = vmatpush2.bf16.msra.mxu0 %v5890_v40  ;;  %v5986_v40 = vld [vmem:[#allocation2 + $0x400] ss:$8 sps:$4 sm:$0xff]  }
  0x7e   :  { %4041 = vmatprep.subr.bf16.mxu0 %v5898_v41  ;;  %4083 = vmatpush2.bf16.msra.mxu1 %v5893_v42  ;;  %v5994_v41 = vld [vmem:[#allocation2 + $0x4f4] ss:$8 sps:$4 sm:$0xff]   ;;  %v5989_v42 = vld [vmem:[#allocation2 + $0x500] ss:$8 sps:$4 sm:$0xff]  }
  0x7f   :  { %4084 = vmatprep.subr.bf16.mxu1 %v5901_v43  ;;  %v5997_v43 = vld [vmem:[#allocation2 + $0x5f4] ss:$8 sps:$4 sm:$0xff]  }
  0x81   :  { %4042 = vmatpush2.bf16.msra.mxu0 %v5896_v44  ;;  %v5992_v44 = vld [vmem:[#allocation2 + $0x4f0] ss:$8 sps:$4 sm:$0xff]  }
  0x82   :  { %4043 = vmatprep.subr.bf16.mxu0 %v5904_v45  ;;  %4085 = vmatpush2.bf16.msra.mxu1 %v5899_v46  ;;  %v6000_v45 = vld [vmem:[#allocation2 + $0x4e4] ss:$8 sps:$4 sm:$0xff]   ;;  %v5995_v46 = vld [vmem:[#allocation2 + $0x5f0] ss:$8 sps:$4 sm:$0xff]  }
  0x83   :  { %4086 = vmatprep.subr.bf16.mxu1 %v5907_v47  ;;  %v6003_v47 = vld [vmem:[#allocation2 + $0x5e4] ss:$8 sps:$4 sm:$0xff]  }
  0x85   :  { %4044 = vmatpush2.bf16.msra.mxu0 %v5902_v48  ;;  %v5998_v48 = vld [vmem:[#allocation2 + $0x4e0] ss:$8 sps:$4 sm:$0xff]  }
  0x86   :  { %4045 = vmatprep.subr.bf16.mxu0 %v5910_v49  ;;  %4087 = vmatpush2.bf16.msra.mxu1 %v5905_v50  ;;  %v6006_v49 = vld [vmem:[#allocation2 + $0x4d4] ss:$8 sps:$4 sm:$0xff]   ;;  %v6001_v50 = vld [vmem:[#allocation2 + $0x5e0] ss:$8 sps:$4 sm:$0xff]  }
  0x87   :  { %4088 = vmatprep.subr.bf16.mxu1 %v5913_v51  ;;  %v6009_v51 = vld [vmem:[#allocation2 + $0x5d4] ss:$8 sps:$4 sm:$0xff]  }
  0x89   :  { %4046 = vmatpush2.bf16.msra.mxu0 %v5908_v52  ;;  %v6004_v52 = vld [vmem:[#allocation2 + $0x4d0] ss:$8 sps:$4 sm:$0xff]  }
  0x8a   :  { %4047 = vmatprep.subr.bf16.mxu0 %v5916_v53  ;;  %4089 = vmatpush2.bf16.msra.mxu1 %v5911_v54  ;;  %v6012_v53 = vld [vmem:[#allocation2 + $0x4c4] ss:$8 sps:$4 sm:$0xff]   ;;  %v6007_v54 = vld [vmem:[#allocation2 + $0x5d0] ss:$8 sps:$4 sm:$0xff]  }
  0x8b   :  { %4090 = vmatprep.subr.bf16.mxu1 %v5919_v55  ;;  %v6015_v55 = vld [vmem:[#allocation2 + $0x5c4] ss:$8 sps:$4 sm:$0xff]  }
  0x8d   :  { %4048 = vmatpush2.bf16.msra.mxu0 %v5914_v56  ;;  %v6010_v56 = vld [vmem:[#allocation2 + $0x4c0] ss:$8 sps:$4 sm:$0xff]  }
  0x8e   :  { %4049 = vmatprep.subr.bf16.mxu0 %v5922_v57  ;;  %4091 = vmatpush2.bf16.msra.mxu1 %v5917_v58  ;;  %v6018_v57 = vld [vmem:[#allocation2 + $0x4b4] ss:$8 sps:$4 sm:$0xff]   ;;  %v6013_v58 = vld [vmem:[#allocation2 + $0x5c0] ss:$8 sps:$4 sm:$0xff]  }
  0x8f   :  { %4092 = vmatprep.subr.bf16.mxu1 %v5925_v59  ;;  %v6021_v59 = vld [vmem:[#allocation2 + $0x5b4] ss:$8 sps:$4 sm:$0xff]  }
  0x91   :  { %4050 = vmatpush2.bf16.msra.mxu0 %v5920_v60  ;;  %v6016_v60 = vld [vmem:[#allocation2 + $0x4b0] ss:$8 sps:$4 sm:$0xff]  }
  0x92   :  { %4051 = vmatprep.subr.bf16.mxu0 %v5928_v61  ;;  %4093 = vmatpush2.bf16.msra.mxu1 %v5923_v62  ;;  %v6024_v61 = vld [vmem:[#allocation2 + $0x4a4] ss:$8 sps:$4 sm:$0xff]   ;;  %v6019_v62 = vld [vmem:[#allocation2 + $0x5b0] ss:$8 sps:$4 sm:$0xff]  }
  0x93   :  { %4094 = vmatprep.subr.bf16.mxu1 %v5931_v63  ;;  %v6027_v63 = vld [vmem:[#allocation2 + $0x5a4] ss:$8 sps:$4 sm:$0xff]  }
  0x95   :  { %4052 = vmatpush2.bf16.msra.mxu0 %v5926_v0  ;;  %v6022_v0 = vld [vmem:[#allocation2 + $0x4a0] ss:$8 sps:$4 sm:$0xff]  }
  0x96   :  { %4053 = vmatprep.subr.bf16.mxu0 %v5934_v1  ;;  %4095 = vmatpush2.bf16.msra.mxu1 %v5929_v2  ;;  %v6030_v1 = vld [vmem:[#allocation2 + $0x494] ss:$8 sps:$4 sm:$0xff]   ;;  %v6025_v2 = vld [vmem:[#allocation2 + $0x5a0] ss:$8 sps:$4 sm:$0xff]  }
  0x97   :  { %4096 = vmatprep.subr.bf16.mxu1 %v5937_v3  ;;  %v6033_v3 = vld [vmem:[#allocation2 + $0x594] ss:$8 sps:$4 sm:$0xff]  }
  0x99   :  { %4054 = vmatpush2.bf16.msra.mxu0 %v5932_v4  ;;  %v6028_v4 = vld [vmem:[#allocation2 + $0x490] ss:$8 sps:$4 sm:$0xff]  }
  0x9a   :  { %4109 = vmatprep.subr.bf16.mxu0 %v5943_v5  ;;  %4097 = vmatpush2.bf16.msra.mxu1 %v5935_v6  ;;  %v6036_v5 = vld [vmem:[#allocation2 + $0x484] ss:$8 sps:$4 sm:$0xff]   ;;  %v6031_v6 = vld [vmem:[#allocation2 + $0x590] ss:$8 sps:$4 sm:$0xff]  }
  0x9b   :  { %4152 = vmatprep.subr.bf16.mxu1 %v5949_v8  ;;  %v6039_v8 = vld [vmem:[#allocation2 + $0x584] ss:$8 sps:$4 sm:$0xff]  }
  0x9c   :  { %4056 = vmatmul.mubr.bf16.vlgmr.msra.gmra.mxu0 %v5938_v7  ;;  %v6034_v7 = vld [vmem:[#allocation2 + $0x480] ss:$8 sps:$4 sm:$0xff]  }
  0x9d   :  { %4110 = vmatpush1.bf16.msra.mxu0 %v5941_v9  ;;  %4099 = vmatmul.mubr.bf16.vlgmr.msra.gmra.mxu1 %v5944_v10  ;;  %v6037_v9 = vld [vmem:[#allocation2 + $0x580] ss:$8 sps:$4 sm:$0xff]   ;;  %v6045_v10 = vld [vmem:[#allocation2 + $0x674] ss:$8 sps:$4 sm:$0xff]  }
  0x9e   :  { %4111 = vmatprep.subr.bf16.mxu0 %v5952_v11  ;;  %4153 = vmatpush1.bf16.msra.mxu1 %v5947_v12  ;;  %v6040_v11 = vld [vmem:[%s7042_s0 + $0x20] ss:$152 sps:$4 sm:$0xff]  }
  0x9f   :  { %4154 = vmatprep.subr.bf16.mxu1 %v5955_v13  ;;  %4141 = vmatprep.mubr.bf16.mxu0 %v6042_v18  ;;  %v6043_v12 = vld [vmem:[#allocation2 + $0x670] ss:$8 sps:$4 sm:$0xff]   ;;  %v6046_v13 = vld [vmem:[%s7042_s0 + $0x28] ss:$152 sps:$4 sm:$0xff]   ;;  %v6150_v18 = vld [vmem:[%s7042_s0 + $0x3c] ss:$152 sps:$4 sm:$0xff]  }
  0xa0   :  { %4184 = vmatprep.mubr.bf16.mxu1 %v6048_v22  ;;  %v6055_v22 = vld [vmem:[#allocation2 + $0x760] ss:$8 sps:$4 sm:$0xff]  }
  0xa1   :  { %4112 = vmatpush1.bf16.msra.mxu0 %v5950_v14  ;;  %v6051_v14 = vld [vmem:[#allocation2 + $0x774] ss:$8 sps:$4 sm:$0xff]  }
  0xa2   :  { %4113 = vmatprep.subr.bf16.mxu0 %v5958_v15  ;;  %4155 = vmatpush1.bf16.msra.mxu1 %v5953_v16  ;;  %v6144_v15 = vld [vmem:[%s7042_s0 + $0x34] ss:$152 sps:$4 sm:$0xff]  }
  0xa3   :  { %4156 = vmatprep.subr.bf16.mxu1 %v5961_v17  ;;  %v6054_v16 = vld [vmem:[#allocation2 + $0x664] ss:$8 sps:$4 sm:$0xff]   ;;  %v6049_v17 = vld [vmem:[#allocation2 + $0x770] ss:$8 sps:$4 sm:$0xff]  }
  0xa5   :  { %4114 = vmatpush1.bf16.msra.mxu0 %v5956_v19  ;;  %v6057_v19 = vld [vmem:[#allocation2 + $0x764] ss:$8 sps:$4 sm:$0xff]  }
  0xa6   :  { %4115 = vmatprep.subr.bf16.mxu0 %v5964_v21  ;;  %4157 = vmatpush1.bf16.msra.mxu1 %v5959_v20  ;;  %v6052_v20 = vld [vmem:[#allocation2 + $0x660] ss:$8 sps:$4 sm:$0xff]   ;;  %v6060_v21 = vld [vmem:[#allocation2 + $0x654] ss:$8 sps:$4 sm:$0xff]  }
  0xa7   :  { %4158 = vmatprep.subr.bf16.mxu1 %v5967_v23  ;;  %v6063_v23 = vld [vmem:[#allocation2 + $0x754] ss:$8 sps:$4 sm:$0xff]  }
  0xa9   :  { %4116 = vmatpush1.bf16.msra.mxu0 %v5962_v24  ;;  %v6058_v24 = vld [vmem:[#allocation2 + $0x650] ss:$8 sps:$4 sm:$0xff]  }
  0xaa   :  { %4117 = vmatprep.subr.bf16.mxu0 %v5970_v25  ;;  %4159 = vmatpush1.bf16.msra.mxu1 %v5965_v26  ;;  %v6066_v25 = vld [vmem:[#allocation2 + $0x644] ss:$8 sps:$4 sm:$0xff]   ;;  %v6061_v26 = vld [vmem:[#allocation2 + $0x750] ss:$8 sps:$4 sm:$0xff]  }
  0xab   :  { %4160 = vmatprep.subr.bf16.mxu1 %v5973_v27  ;;  %v6069_v27 = vld [vmem:[#allocation2 + $0x744] ss:$8 sps:$4 sm:$0xff]  }
  0xad   :  { %4118 = vmatpush1.bf16.msra.mxu0 %v5968_v28  ;;  %v6064_v28 = vld [vmem:[#allocation2 + $0x640] ss:$8 sps:$4 sm:$0xff]  }
  0xae   :  { %4119 = vmatprep.subr.bf16.mxu0 %v5976_v29  ;;  %4161 = vmatpush1.bf16.msra.mxu1 %v5971_v30  ;;  %v6072_v29 = vld [vmem:[#allocation2 + $0x634] ss:$8 sps:$4 sm:$0xff]   ;;  %v6067_v30 = vld [vmem:[#allocation2 + $0x740] ss:$8 sps:$4 sm:$0xff]  }
  0xaf   :  { %4162 = vmatprep.subr.bf16.mxu1 %v5979_v31  ;;  %v6075_v31 = vld [vmem:[#allocation2 + $0x734] ss:$8 sps:$4 sm:$0xff]  }
  0xb1   :  { %4120 = vmatpush1.bf16.msra.mxu0 %v5974_v32  ;;  %v6070_v32 = vld [vmem:[#allocation2 + $0x630] ss:$8 sps:$4 sm:$0xff]  }
  0xb2   :  { %4121 = vmatprep.subr.bf16.mxu0 %v5982_v33  ;;  %4163 = vmatpush1.bf16.msra.mxu1 %v5977_v34  ;;  %v6078_v33 = vld [vmem:[#allocation2 + $0x624] ss:$8 sps:$4 sm:$0xff]   ;;  %v6073_v34 = vld [vmem:[#allocation2 + $0x730] ss:$8 sps:$4 sm:$0xff]  }
  0xb3   :  { %4164 = vmatprep.subr.bf16.mxu1 %v5985_v35  ;;  %v6081_v35 = vld [vmem:[#allocation2 + $0x724] ss:$8 sps:$4 sm:$0xff]  }
  0xb5   :  { %4122 = vmatpush1.bf16.msra.mxu0 %v5980_v36  ;;  %v6076_v36 = vld [vmem:[#allocation2 + $0x620] ss:$8 sps:$4 sm:$0xff]  }
  0xb6   :  { %4123 = vmatprep.subr.bf16.mxu0 %v5988_v37  ;;  %4165 = vmatpush1.bf16.msra.mxu1 %v5983_v38  ;;  %v6084_v37 = vld [vmem:[#allocation2 + $0x614] ss:$8 sps:$4 sm:$0xff]   ;;  %v6079_v38 = vld [vmem:[#allocation2 + $0x720] ss:$8 sps:$4 sm:$0xff]  }
  0xb7   :  { %4166 = vmatprep.subr.bf16.mxu1 %v5991_v39  ;;  %v6087_v39 = vld [vmem:[#allocation2 + $0x714] ss:$8 sps:$4 sm:$0xff]  }
  0xb9   :  { %4124 = vmatpush1.bf16.msra.mxu0 %v5986_v40  ;;  %v6082_v40 = vld [vmem:[#allocation2 + $0x610] ss:$8 sps:$4 sm:$0xff]  }
  0xba   :  { %4125 = vmatprep.subr.bf16.mxu0 %v5994_v41  ;;  %4167 = vmatpush1.bf16.msra.mxu1 %v5989_v42  ;;  %v6090_v41 = vld [vmem:[#allocation2 + $0x604] ss:$8 sps:$4 sm:$0xff]   ;;  %v6085_v42 = vld [vmem:[#allocation2 + $0x710] ss:$8 sps:$4 sm:$0xff]  }
  0xbb   :  { %4168 = vmatprep.subr.bf16.mxu1 %v5997_v43  ;;  %v6093_v43 = vld [vmem:[#allocation2 + $0x704] ss:$8 sps:$4 sm:$0xff]  }
  0xbd   :  { %4126 = vmatpush2.bf16.msra.mxu0 %v5992_v44  ;;  %v6088_v44 = vld [vmem:[#allocation2 + $0x600] ss:$8 sps:$4 sm:$0xff]  }
  0xbe   :  { %4127 = vmatprep.subr.bf16.mxu0 %v6000_v45  ;;  %4169 = vmatpush2.bf16.msra.mxu1 %v5995_v46  ;;  %v6096_v45 = vld [vmem:[#allocation2 + $0x6f4] ss:$8 sps:$4 sm:$0xff]   ;;  %v6091_v46 = vld [vmem:[#allocation2 + $0x700] ss:$8 sps:$4 sm:$0xff]  }
  0xbf   :  { %4170 = vmatprep.subr.bf16.mxu1 %v6003_v47  ;;  %v6099_v47 = vld [vmem:[#allocation2 + $0x7f4] ss:$8 sps:$4 sm:$0xff]  }
  0xc1   :  { %4128 = vmatpush2.bf16.msra.mxu0 %v5998_v48  ;;  %v6094_v48 = vld [vmem:[#allocation2 + $0x6f0] ss:$8 sps:$4 sm:$0xff]  }
  0xc2   :  { %4129 = vmatprep.subr.bf16.mxu0 %v6006_v49  ;;  %4171 = vmatpush2.bf16.msra.mxu1 %v6001_v50  ;;  %v6102_v49 = vld [vmem:[#allocation2 + $0x6e4] ss:$8 sps:$4 sm:$0xff]   ;;  %v6097_v50 = vld [vmem:[#allocation2 + $0x7f0] ss:$8 sps:$4 sm:$0xff]  }
  0xc3   :  { %4172 = vmatprep.subr.bf16.mxu1 %v6009_v51  ;;  %v6105_v51 = vld [vmem:[#allocation2 + $0x7e4] ss:$8 sps:$4 sm:$0xff]  }
  0xc5   :  { %4130 = vmatpush2.bf16.msra.mxu0 %v6004_v52  ;;  %v6100_v52 = vld [vmem:[#allocation2 + $0x6e0] ss:$8 sps:$4 sm:$0xff]  }
  0xc6   :  { %4131 = vmatprep.subr.bf16.mxu0 %v6012_v53  ;;  %4173 = vmatpush2.bf16.msra.mxu1 %v6007_v54  ;;  %v6108_v53 = vld [vmem:[#allocation2 + $0x6d4] ss:$8 sps:$4 sm:$0xff]   ;;  %v6103_v54 = vld [vmem:[#allocation2 + $0x7e0] ss:$8 sps:$4 sm:$0xff]  }
  0xc7   :  { %4174 = vmatprep.subr.bf16.mxu1 %v6015_v55  ;;  %v6111_v55 = vld [vmem:[#allocation2 + $0x7d4] ss:$8 sps:$4 sm:$0xff]  }
  0xc9   :  { %4132 = vmatpush2.bf16.msra.mxu0 %v6010_v56  ;;  %v6106_v56 = vld [vmem:[#allocation2 + $0x6d0] ss:$8 sps:$4 sm:$0xff]  }
  0xca   :  { %4133 = vmatprep.subr.bf16.mxu0 %v6018_v57  ;;  %4175 = vmatpush2.bf16.msra.mxu1 %v6013_v58  ;;  %v6114_v57 = vld [vmem:[#allocation2 + $0x6c4] ss:$8 sps:$4 sm:$0xff]   ;;  %v6109_v58 = vld [vmem:[#allocation2 + $0x7d0] ss:$8 sps:$4 sm:$0xff]  }
  0xcb   :  { %4176 = vmatprep.subr.bf16.mxu1 %v6021_v59  ;;  %v6117_v59 = vld [vmem:[#allocation2 + $0x7c4] ss:$8 sps:$4 sm:$0xff]  }
  0xcd   :  { %4134 = vmatpush2.bf16.msra.mxu0 %v6016_v60  ;;  %v6112_v60 = vld [vmem:[#allocation2 + $0x6c0] ss:$8 sps:$4 sm:$0xff]  }
  0xce   :  { %4135 = vmatprep.subr.bf16.mxu0 %v6024_v61  ;;  %4177 = vmatpush2.bf16.msra.mxu1 %v6019_v62  ;;  %v6120_v61 = vld [vmem:[#allocation2 + $0x6b4] ss:$8 sps:$4 sm:$0xff]   ;;  %v6115_v62 = vld [vmem:[#allocation2 + $0x7c0] ss:$8 sps:$4 sm:$0xff]  }
  0xcf   :  { %4178 = vmatprep.subr.bf16.mxu1 %v6027_v63  ;;  %v6123_v63 = vld [vmem:[#allocation2 + $0x7b4] ss:$8 sps:$4 sm:$0xff]  }
  0xd1   :  { %4136 = vmatpush2.bf16.msra.mxu0 %v6022_v0  ;;  %v6118_v0 = vld [vmem:[#allocation2 + $0x6b0] ss:$8 sps:$4 sm:$0xff]  }
  0xd2   :  { %4137 = vmatprep.subr.bf16.mxu0 %v6030_v1  ;;  %4179 = vmatpush2.bf16.msra.mxu1 %v6025_v2  ;;  %v6126_v1 = vld [vmem:[#allocation2 + $0x6a4] ss:$8 sps:$4 sm:$0xff]   ;;  %v6121_v2 = vld [vmem:[#allocation2 + $0x7b0] ss:$8 sps:$4 sm:$0xff]  }
  0xd3   :  { %4180 = vmatprep.subr.bf16.mxu1 %v6033_v3  ;;  %v6129_v3 = vld [vmem:[#allocation2 + $0x7a4] ss:$8 sps:$4 sm:$0xff]  }
  0xd5   :  { %4138 = vmatpush2.bf16.msra.mxu0 %v6028_v4  ;;  %v6124_v4 = vld [vmem:[#allocation2 + $0x6a0] ss:$8 sps:$4 sm:$0xff]  }
  0xd6   :  { %4139 = vmatprep.subr.bf16.mxu0 %v6036_v5  ;;  %4181 = vmatpush2.bf16.msra.mxu1 %v6031_v6  ;;  %v6132_v5 = vld [vmem:[#allocation2 + $0x694] ss:$8 sps:$4 sm:$0xff]   ;;  %v6127_v6 = vld [vmem:[#allocation2 + $0x7a0] ss:$8 sps:$4 sm:$0xff]  }
  0xd7   :  { %4182 = vmatprep.subr.bf16.mxu1 %v6039_v8  ;;  %v6130_v8 = vld [vmem:[#allocation2 + $0x690] ss:$8 sps:$4 sm:$0xff]  }
  0xd9   :  { %4140 = vmatpush2.bf16.msra.mxu0 %v6034_v7  ;;  %v6135_v7 = vld [vmem:[#allocation2 + $0x794] ss:$8 sps:$4 sm:$0xff]  }
  0xda   :  { %4195 = vmatprep.subr.bf16.mxu0 %v6045_v10  ;;  %4183 = vmatpush2.bf16.msra.mxu1 %v6037_v9  ;;  %v6138_v9 = vld [vmem:[#allocation2 + $0x684] ss:$8 sps:$4 sm:$0xff]   ;;  %v6133_v10 = vld [vmem:[#allocation2 + $0x790] ss:$8 sps:$4 sm:$0xff]  }
  0xdb   :  { %4238 = vmatprep.subr.bf16.mxu1 %v6051_v14  ;;  %v6147_v14 = vld [vmem:[#allocation2 + $0x874] ss:$8 sps:$4 sm:$0xff]  }
  0xdc   :  { %4142 = vmatmul.mubr.bf16.vlgmr.msra.gmra.mxu0 %v6040_v11  ;;  %v6136_v11 = vld [vmem:[#allocation2 + $0x680] ss:$8 sps:$4 sm:$0xff]  }
  0xdd   :  { %4196 = vmatpush1.bf16.msra.mxu0 %v6043_v12  ;;  %4227 = vmatprep.mubr.bf16.mxu0 %v6144_v15  ;;  %v6141_v12 = vld [vmem:[#allocation2 + $0x784] ss:$8 sps:$4 sm:$0xff]   ;;  %v6142_v15 = vld [vmem:[%s7042_s0 + $0x30] ss:$152 sps:$4 sm:$0xff]  }
  0xde   :  { %4185 = vmatmul.mubr.bf16.vlgmr.msra.gmra.mxu1 %v6046_v13  ;;  %4197 = vmatprep.subr.bf16.mxu0 %v6054_v16  ;;  %v6139_v13 = vld [vmem:[#allocation2 + $0x780] ss:$8 sps:$4 sm:$0xff]   ;;  %v6145_v16 = vld [vmem:[#allocation2 + $0x870] ss:$8 sps:$4 sm:$0xff]  }
  0xdf   :  { %4239 = vmatpush1.bf16.msra.mxu1 %v6049_v17  ;;  %4270 = vmatprep.mubr.bf16.mxu1 %v6150_v18  ;;  %v6148_v17 = vld [vmem:[%s7042_s0 + $0x38] ss:$152 sps:$4 sm:$0xff]   ;;  %v6153_v18 = vld [vmem:[#allocation2 + $0x974] ss:$8 sps:$4 sm:$0xff]  }
  0xe0   :  { %4240 = vmatprep.subr.bf16.mxu1 %v6057_v19  ;;  %v6246_v19 = vld [vmem:[%s7042_s0 + $0x44] ss:$152 sps:$4 sm:$0xff]  }
  0xe1   :  { %4198 = vmatpush1.bf16.msra.mxu0 %v6052_v20  ;;  %v6156_v20 = vld [vmem:[#allocation2 + $0x864] ss:$8 sps:$4 sm:$0xff]  }
  0xe2   :  { %4199 = vmatprep.subr.bf16.mxu0 %v6060_v21  ;;  %v6151_v21 = vld [vmem:[#allocation2 + $0x970] ss:$8 sps:$4 sm:$0xff]  }
  0xe3   :  { %4241 = vmatpush1.bf16.msra.mxu1 %v6055_v22  ;;  %v6252_v22 = vld [vmem:[%s7042_s0 + $0x4c] ss:$152 sps:$4 sm:$0xff]  }
  0xe4   :  { %4242 = vmatprep.subr.bf16.mxu1 %v6063_v23  ;;  %v6159_v23 = vld [vmem:[#allocation2 + $0x964] ss:$8 sps:$4 sm:$0xff]  }
  0xe5   :  { %4200 = vmatpush1.bf16.msra.mxu0 %v6058_v24  ;;  %v6154_v24 = vld [vmem:[#allocation2 + $0x860] ss:$8 sps:$4 sm:$0xff]  }
  0xe6   :  { %4201 = vmatprep.subr.bf16.mxu0 %v6066_v25  ;;  %v6162_v25 = vld [vmem:[#allocation2 + $0x854] ss:$8 sps:$4 sm:$0xff]  }
  0xe7   :  { %4243 = vmatpush1.bf16.msra.mxu1 %v6061_v26  ;;  %v6157_v26 = vld [vmem:[#allocation2 + $0x960] ss:$8 sps:$4 sm:$0xff]  }
  0xe8   :  { %4244 = vmatprep.subr.bf16.mxu1 %v6069_v27  ;;  %v6165_v27 = vld [vmem:[#allocation2 + $0x954] ss:$8 sps:$4 sm:$0xff]  }
  0xe9   :  { %4202 = vmatpush1.bf16.msra.mxu0 %v6064_v28  ;;  %v6160_v28 = vld [vmem:[#allocation2 + $0x850] ss:$8 sps:$4 sm:$0xff]  }
  0xea   :  { %4203 = vmatprep.subr.bf16.mxu0 %v6072_v29  ;;  %v6168_v29 = vld [vmem:[#allocation2 + $0x844] ss:$8 sps:$4 sm:$0xff]  }
  0xeb   :  { %4245 = vmatpush1.bf16.msra.mxu1 %v6067_v30  ;;  %v6163_v30 = vld [vmem:[#allocation2 + $0x950] ss:$8 sps:$4 sm:$0xff]  }
  0xec   :  { %4246 = vmatprep.subr.bf16.mxu1 %v6075_v31  ;;  %v6171_v31 = vld [vmem:[#allocation2 + $0x944] ss:$8 sps:$4 sm:$0xff]  }
  0xed   :  { %4204 = vmatpush1.bf16.msra.mxu0 %v6070_v32  ;;  %v6166_v32 = vld [vmem:[#allocation2 + $0x840] ss:$8 sps:$4 sm:$0xff]  }
  0xee   :  { %4205 = vmatprep.subr.bf16.mxu0 %v6078_v33  ;;  %v6174_v33 = vld [vmem:[#allocation2 + $0x834] ss:$8 sps:$4 sm:$0xff]  }
  0xef   :  { %4247 = vmatpush1.bf16.msra.mxu1 %v6073_v34  ;;  %v6169_v34 = vld [vmem:[#allocation2 + $0x940] ss:$8 sps:$4 sm:$0xff]  }
  0xf0   :  { %4248 = vmatprep.subr.bf16.mxu1 %v6081_v35  ;;  %v6177_v35 = vld [vmem:[#allocation2 + $0x934] ss:$8 sps:$4 sm:$0xff]  }
  0xf1   :  { %4206 = vmatpush1.bf16.msra.mxu0 %v6076_v36  ;;  %v6172_v36 = vld [vmem:[#allocation2 + $0x830] ss:$8 sps:$4 sm:$0xff]  }
  0xf2   :  { %4207 = vmatprep.subr.bf16.mxu0 %v6084_v37  ;;  %v6180_v37 = vld [vmem:[#allocation2 + $0x824] ss:$8 sps:$4 sm:$0xff]  }
  0xf3   :  { %4249 = vmatpush1.bf16.msra.mxu1 %v6079_v38  ;;  %v6175_v38 = vld [vmem:[#allocation2 + $0x930] ss:$8 sps:$4 sm:$0xff]  }
  0xf4   :  { %4250 = vmatprep.subr.bf16.mxu1 %v6087_v39  ;;  %v6183_v39 = vld [vmem:[#allocation2 + $0x924] ss:$8 sps:$4 sm:$0xff]  }
  0xf5   :  { %4208 = vmatpush1.bf16.msra.mxu0 %v6082_v40  ;;  %v6178_v40 = vld [vmem:[#allocation2 + $0x820] ss:$8 sps:$4 sm:$0xff]  }
  0xf6   :  { %4209 = vmatprep.subr.bf16.mxu0 %v6090_v41  ;;  %v6186_v41 = vld [vmem:[#allocation2 + $0x814] ss:$8 sps:$4 sm:$0xff]  }
  0xf7   :  { %4251 = vmatpush1.bf16.msra.mxu1 %v6085_v42  ;;  %v6181_v42 = vld [vmem:[#allocation2 + $0x920] ss:$8 sps:$4 sm:$0xff]  }
  0xf8   :  { %4252 = vmatprep.subr.bf16.mxu1 %v6093_v43  ;;  %v6189_v43 = vld [vmem:[#allocation2 + $0x914] ss:$8 sps:$4 sm:$0xff]  }
  0xf9   :  { %4210 = vmatpush1.bf16.msra.mxu0 %v6088_v44  ;;  %v6184_v44 = vld [vmem:[#allocation2 + $0x810] ss:$8 sps:$4 sm:$0xff]  }
  0xfa   :  { %4211 = vmatprep.subr.bf16.mxu0 %v6096_v45  ;;  %v6192_v45 = vld [vmem:[#allocation2 + $0x804] ss:$8 sps:$4 sm:$0xff]  }
  0xfb   :  { %4253 = vmatpush1.bf16.msra.mxu1 %v6091_v46  ;;  %v6187_v46 = vld [vmem:[#allocation2 + $0x910] ss:$8 sps:$4 sm:$0xff]  }
  0xfc   :  { %4254 = vmatprep.subr.bf16.mxu1 %v6099_v47  ;;  %v6195_v47 = vld [vmem:[#allocation2 + $0x904] ss:$8 sps:$4 sm:$0xff]  }
  0xfd   :  { %4212 = vmatpush2.bf16.msra.mxu0 %v6094_v48  ;;  %v6190_v48 = vld [vmem:[#allocation2 + $0x800] ss:$8 sps:$4 sm:$0xff]  }
  0xfe   :  { %4213 = vmatprep.subr.bf16.mxu0 %v6102_v49  ;;  %v6198_v49 = vld [vmem:[#allocation2 + $0x8f4] ss:$8 sps:$4 sm:$0xff]  }
  0xff   :  { %4255 = vmatpush2.bf16.msra.mxu1 %v6097_v50  ;;  %v6193_v50 = vld [vmem:[#allocation2 + $0x900] ss:$8 sps:$4 sm:$0xff]  }
 0x100   :  { %4256 = vmatprep.subr.bf16.mxu1 %v6105_v51  ;;  %v6201_v51 = vld [vmem:[#allocation2 + $0x9f4] ss:$8 sps:$4 sm:$0xff]  }
 0x101   :  { %4214 = vmatpush2.bf16.msra.mxu0 %v6100_v52  ;;  %v6196_v52 = vld [vmem:[#allocation2 + $0x8f0] ss:$8 sps:$4 sm:$0xff]  }
 0x102   :  { %4215 = vmatprep.subr.bf16.mxu0 %v6108_v53  ;;  %v6204_v53 = vld [vmem:[#allocation2 + $0x8e4] ss:$8 sps:$4 sm:$0xff]  }
 0x103   :  { %4257 = vmatpush2.bf16.msra.mxu1 %v6103_v54  ;;  %v6199_v54 = vld [vmem:[#allocation2 + $0x9f0] ss:$8 sps:$4 sm:$0xff]  }
 0x104   :  { %4258 = vmatprep.subr.bf16.mxu1 %v6111_v55  ;;  %v6207_v55 = vld [vmem:[#allocation2 + $0x9e4] ss:$8 sps:$4 sm:$0xff]  }
 0x105   :  { %4216 = vmatpush2.bf16.msra.mxu0 %v6106_v56  ;;  %v6202_v56 = vld [vmem:[#allocation2 + $0x8e0] ss:$8 sps:$4 sm:$0xff]  }
 0x106   :  { %4217 = vmatprep.subr.bf16.mxu0 %v6114_v57  ;;  %v6210_v57 = vld [vmem:[#allocation2 + $0x8d4] ss:$8 sps:$4 sm:$0xff]  }
 0x107   :  { %4259 = vmatpush2.bf16.msra.mxu1 %v6109_v58  ;;  %v6205_v58 = vld [vmem:[#allocation2 + $0x9e0] ss:$8 sps:$4 sm:$0xff]  }
 0x108   :  { %4260 = vmatprep.subr.bf16.mxu1 %v6117_v59  ;;  %v6213_v59 = vld [vmem:[#allocation2 + $0x9d4] ss:$8 sps:$4 sm:$0xff]  }
 0x109   :  { %4218 = vmatpush2.bf16.msra.mxu0 %v6112_v60  ;;  %v6208_v60 = vld [vmem:[#allocation2 + $0x8d0] ss:$8 sps:$4 sm:$0xff]  }
 0x10a   :  { %4219 = vmatprep.subr.bf16.mxu0 %v6120_v61  ;;  %v6216_v61 = vld [vmem:[#allocation2 + $0x8c4] ss:$8 sps:$4 sm:$0xff]  }
 0x10b   :  { %4261 = vmatpush2.bf16.msra.mxu1 %v6115_v62  ;;  %v6211_v62 = vld [vmem:[#allocation2 + $0x9d0] ss:$8 sps:$4 sm:$0xff]  }
 0x10c   :  { %4262 = vmatprep.subr.bf16.mxu1 %v6123_v63  ;;  %v6219_v63 = vld [vmem:[#allocation2 + $0x9c4] ss:$8 sps:$4 sm:$0xff]  }
 0x10d   :  { %4220 = vmatpush2.bf16.msra.mxu0 %v6118_v0  ;;  %v6214_v0 = vld [vmem:[#allocation2 + $0x8c0] ss:$8 sps:$4 sm:$0xff]  }
 0x10e   :  { %4221 = vmatprep.subr.bf16.mxu0 %v6126_v1  ;;  %v6222_v1 = vld [vmem:[#allocation2 + $0x8b4] ss:$8 sps:$4 sm:$0xff]  }
 0x10f   :  { %4263 = vmatpush2.bf16.msra.mxu1 %v6121_v2  ;;  %v6217_v2 = vld [vmem:[#allocation2 + $0x9c0] ss:$8 sps:$4 sm:$0xff]  }
 0x110   :  { %4264 = vmatprep.subr.bf16.mxu1 %v6129_v3  ;;  %v6225_v3 = vld [vmem:[#allocation2 + $0x9b4] ss:$8 sps:$4 sm:$0xff]  }
 0x111   :  { %4222 = vmatpush2.bf16.msra.mxu0 %v6124_v4  ;;  %v6220_v4 = vld [vmem:[#allocation2 + $0x8b0] ss:$8 sps:$4 sm:$0xff]  }
 0x112   :  { %4223 = vmatprep.subr.bf16.mxu0 %v6132_v5  ;;  %v6228_v5 = vld [vmem:[#allocation2 + $0x8a4] ss:$8 sps:$4 sm:$0xff]  }
 0x113   :  { %4265 = vmatpush2.bf16.msra.mxu1 %v6127_v6  ;;  %v6223_v6 = vld [vmem:[#allocation2 + $0x9b0] ss:$8 sps:$4 sm:$0xff]  }
 0x114   :  { %4266 = vmatprep.subr.bf16.mxu1 %v6135_v7  ;;  %v6226_v7 = vld [vmem:[#allocation2 + $0x8a0] ss:$8 sps:$4 sm:$0xff]  }
 0x115   :  { %4224 = vmatpush2.bf16.msra.mxu0 %v6130_v8  ;;  %v6231_v8 = vld [vmem:[#allocation2 + $0x9a4] ss:$8 sps:$4 sm:$0xff]  }
 0x116   :  { %4225 = vmatprep.subr.bf16.mxu0 %v6138_v9  ;;  %v6229_v9 = vld [vmem:[#allocation2 + $0x9a0] ss:$8 sps:$4 sm:$0xff]  }
 0x117   :  { %4267 = vmatpush2.bf16.msra.mxu1 %v6133_v10  ;;  %v6234_v10 = vld [vmem:[#allocation2 + $0x894] ss:$8 sps:$4 sm:$0xff]  }
 0x118   :  { %4268 = vmatprep.subr.bf16.mxu1 %v6141_v12  ;;  %v6237_v12 = vld [vmem:[#allocation2 + $0x994] ss:$8 sps:$4 sm:$0xff]  }
 0x119   :  { %4226 = vmatpush2.bf16.msra.mxu0 %v6136_v11  ;;  %v6232_v11 = vld [vmem:[#allocation2 + $0x890] ss:$8 sps:$4 sm:$0xff]  }
 0x11a   :  { %4281 = vmatprep.subr.bf16.mxu0 %v6147_v14  ;;  %v6240_v14 = vld [vmem:[#allocation2 + $0x884] ss:$8 sps:$4 sm:$0xff]  }
 0x11b   :  { %4269 = vmatpush2.bf16.msra.mxu1 %v6139_v13  ;;  %v6235_v13 = vld [vmem:[#allocation2 + $0x990] ss:$8 sps:$4 sm:$0xff]  }
 0x11c   :  { %4228 = vmatmul.mubr.bf16.vlgmr.msra.gmra.mxu0 %v6142_v15  ;;  %4324 = vmatprep.subr.bf16.mxu1 %v6153_v18  ;;  %v6238_v15 = vld [vmem:[#allocation2 + $0x880] ss:$8 sps:$4 sm:$0xff]   ;;  %v6249_v18 = vld [vmem:[#allocation2 + $0xa74] ss:$8 sps:$4 sm:$0xff]  }
 0x11d   :  { %4282 = vmatpush1.bf16.msra.mxu0 %v6145_v16  ;;  %4313 = vmatprep.mubr.bf16.mxu0 %v6246_v19  ;;  %v6243_v16 = vld [vmem:[#allocation2 + $0x984] ss:$8 sps:$4 sm:$0xff]   ;;  %v6244_v19 = vld [vmem:[%s7042_s0 + $0x40] ss:$152 sps:$4 sm:$0xff]  }
 0x11e   :  { %4271 = vmatmul.mubr.bf16.vlgmr.msra.gmra.mxu1 %v6148_v17  ;;  %4283 = vmatprep.subr.bf16.mxu0 %v6156_v20  ;;  %v6241_v17 = vld [vmem:[#allocation2 + $0x980] ss:$8 sps:$4 sm:$0xff]   ;;  %v6255_v20 = vld [vmem:[#allocation2 + $0xb74] ss:$8 sps:$4 sm:$0xff]  }
 0x11f   :  { %4325 = vmatpush1.bf16.msra.mxu1 %v6151_v21  ;;  %4356 = vmatprep.mubr.bf16.mxu1 %v6252_v22  ;;  %v6247_v21 = vld [vmem:[#allocation2 + $0xa70] ss:$8 sps:$4 sm:$0xff]   ;;  %v6250_v22 = vld [vmem:[%s7042_s0 + $0x48] ss:$152 sps:$4 sm:$0xff]  }
 0x120   :  { %4326 = vmatprep.subr.bf16.mxu1 %v6159_v23  ;;  %v6348_v23 = vld [vmem:[%s7042_s0 + $0x54] ss:$152 sps:$4 sm:$0xff]  }
 0x121   :  { %4284 = vmatpush1.bf16.msra.mxu0 %v6154_v24  ;;  %v6258_v24 = vld [vmem:[#allocation2 + $0xa64] ss:$8 sps:$4 sm:$0xff]  }
 0x122   :  { %4285 = vmatprep.subr.bf16.mxu0 %v6162_v25  ;;  %v6253_v25 = vld [vmem:[#allocation2 + $0xb70] ss:$8 sps:$4 sm:$0xff]  }
 0x123   :  { %4327 = vmatpush1.bf16.msra.mxu1 %v6157_v26  ;;  %v6354_v26 = vld [vmem:[%s7042_s0 + $0x5c] ss:$152 sps:$4 sm:$0xff]  }
 0x124   :  { %4328 = vmatprep.subr.bf16.mxu1 %v6165_v27  ;;  %v6256_v27 = vld [vmem:[#allocation2 + $0xa60] ss:$8 sps:$4 sm:$0xff]  }
 0x125   :  { %4286 = vmatpush1.bf16.msra.mxu0 %v6160_v28  ;;  %v6261_v28 = vld [vmem:[#allocation2 + $0xb64] ss:$8 sps:$4 sm:$0xff]  }
 0x126   :  { %4287 = vmatprep.subr.bf16.mxu0 %v6168_v29  ;;  %v6259_v29 = vld [vmem:[#allocation2 + $0xb60] ss:$8 sps:$4 sm:$0xff]  }
 0x127   :  { %4329 = vmatpush1.bf16.msra.mxu1 %v6163_v30  ;;  %v6264_v30 = vld [vmem:[#allocation2 + $0xa54] ss:$8 sps:$4 sm:$0xff]  }
 0x128   :  { %4330 = vmatprep.subr.bf16.mxu1 %v6171_v31  ;;  %v6262_v31 = vld [vmem:[#allocation2 + $0xa50] ss:$8 sps:$4 sm:$0xff]  }
 0x129   :  { %4288 = vmatpush1.bf16.msra.mxu0 %v6166_v32  ;;  %v6267_v32 = vld [vmem:[#allocation2 + $0xb54] ss:$8 sps:$4 sm:$0xff]  }
 0x12a   :  { %4289 = vmatprep.subr.bf16.mxu0 %v6174_v33  ;;  %v6265_v33 = vld [vmem:[#allocation2 + $0xb50] ss:$8 sps:$4 sm:$0xff]  }
 0x12b   :  { %4331 = vmatpush1.bf16.msra.mxu1 %v6169_v34  ;;  %v6270_v34 = vld [vmem:[#allocation2 + $0xa44] ss:$8 sps:$4 sm:$0xff]  }
 0x12c   :  { %4332 = vmatprep.subr.bf16.mxu1 %v6177_v35  ;;  %v6268_v35 = vld [vmem:[#allocation2 + $0xa40] ss:$8 sps:$4 sm:$0xff]  }
 0x12d   :  { %4290 = vmatpush1.bf16.msra.mxu0 %v6172_v36  ;;  %v6273_v36 = vld [vmem:[#allocation2 + $0xb44] ss:$8 sps:$4 sm:$0xff]  }
 0x12e   :  { %4291 = vmatprep.subr.bf16.mxu0 %v6180_v37  ;;  %v6271_v37 = vld [vmem:[#allocation2 + $0xb40] ss:$8 sps:$4 sm:$0xff]  }
 0x12f   :  { %4333 = vmatpush1.bf16.msra.mxu1 %v6175_v38  ;;  %v6276_v38 = vld [vmem:[#allocation2 + $0xa34] ss:$8 sps:$4 sm:$0xff]  }
 0x130   :  { %4334 = vmatprep.subr.bf16.mxu1 %v6183_v39  ;;  %v6274_v39 = vld [vmem:[#allocation2 + $0xa30] ss:$8 sps:$4 sm:$0xff]  }
 0x131   :  { %4292 = vmatpush1.bf16.msra.mxu0 %v6178_v40  ;;  %v6279_v40 = vld [vmem:[#allocation2 + $0xb34] ss:$8 sps:$4 sm:$0xff]  }
 0x132   :  { %4293 = vmatprep.subr.bf16.mxu0 %v6186_v41  ;;  %v6277_v41 = vld [vmem:[#allocation2 + $0xb30] ss:$8 sps:$4 sm:$0xff]  }
 0x133   :  { %4335 = vmatpush1.bf16.msra.mxu1 %v6181_v42  ;;  %v6282_v42 = vld [vmem:[#allocation2 + $0xa24] ss:$8 sps:$4 sm:$0xff]  }
 0x134   :  { %4336 = vmatprep.subr.bf16.mxu1 %v6189_v43  ;;  %v6280_v43 = vld [vmem:[#allocation2 + $0xa20] ss:$8 sps:$4 sm:$0xff]  }
 0x135   :  { %4294 = vmatpush1.bf16.msra.mxu0 %v6184_v44  ;;  %v6285_v44 = vld [vmem:[#allocation2 + $0xb24] ss:$8 sps:$4 sm:$0xff]  }
 0x136   :  { %4295 = vmatprep.subr.bf16.mxu0 %v6192_v45  ;;  %v6283_v45 = vld [vmem:[#allocation2 + $0xb20] ss:$8 sps:$4 sm:$0xff]  }
 0x137   :  { %4337 = vmatpush1.bf16.msra.mxu1 %v6187_v46  ;;  %v6288_v46 = vld [vmem:[#allocation2 + $0xa14] ss:$8 sps:$4 sm:$0xff]  }
 0x138   :  { %4338 = vmatprep.subr.bf16.mxu1 %v6195_v47  ;;  %v6286_v47 = vld [vmem:[#allocation2 + $0xa10] ss:$8 sps:$4 sm:$0xff]  }
 0x139   :  { %4296 = vmatpush1.bf16.msra.mxu0 %v6190_v48  ;;  %v6291_v48 = vld [vmem:[#allocation2 + $0xb14] ss:$8 sps:$4 sm:$0xff]  }
 0x13a   :  { %4297 = vmatprep.subr.bf16.mxu0 %v6198_v49  ;;  %v6289_v49 = vld [vmem:[#allocation2 + $0xb10] ss:$8 sps:$4 sm:$0xff]  }
 0x13b   :  { %4339 = vmatpush1.bf16.msra.mxu1 %v6193_v50  ;;  %v6294_v50 = vld [vmem:[#allocation2 + $0xa04] ss:$8 sps:$4 sm:$0xff]  }
 0x13c   :  { %4340 = vmatprep.subr.bf16.mxu1 %v6201_v51  ;;  %v6292_v51 = vld [vmem:[#allocation2 + $0xa00] ss:$8 sps:$4 sm:$0xff]  }
 0x13d   :  { %4298 = vmatpush2.bf16.msra.mxu0 %v6196_v52  ;;  %v6297_v52 = vld [vmem:[#allocation2 + $0xb04] ss:$8 sps:$4 sm:$0xff]  }
 0x13e   :  { %4299 = vmatprep.subr.bf16.mxu0 %v6204_v53  ;;  %v6295_v53 = vld [vmem:[#allocation2 + $0xb00] ss:$8 sps:$4 sm:$0xff]  }
 0x13f   :  { %4341 = vmatpush2.bf16.msra.mxu1 %v6199_v54  ;;  %v6300_v54 = vld [vmem:[#allocation2 + $0xaf4] ss:$8 sps:$4 sm:$0xff]  }
 0x140   :  { %4342 = vmatprep.subr.bf16.mxu1 %v6207_v55  ;;  %v6298_v55 = vld [vmem:[#allocation2 + $0xaf0] ss:$8 sps:$4 sm:$0xff]  }
 0x141   :  { %4300 = vmatpush2.bf16.msra.mxu0 %v6202_v56  ;;  %v6303_v56 = vld [vmem:[#allocation2 + $0xbf4] ss:$8 sps:$4 sm:$0xff]  }
 0x142   :  { %4301 = vmatprep.subr.bf16.mxu0 %v6210_v57  ;;  %v6301_v57 = vld [vmem:[#allocation2 + $0xbf0] ss:$8 sps:$4 sm:$0xff]  }
 0x143   :  { %4343 = vmatpush2.bf16.msra.mxu1 %v6205_v58  ;;  %v6306_v58 = vld [vmem:[#allocation2 + $0xae4] ss:$8 sps:$4 sm:$0xff]  }
 0x144   :  { %4344 = vmatprep.subr.bf16.mxu1 %v6213_v59  ;;  %v6304_v59 = vld [vmem:[#allocation2 + $0xae0] ss:$8 sps:$4 sm:$0xff]  }
 0x145   :  { %4302 = vmatpush2.bf16.msra.mxu0 %v6208_v60  ;;  %v6309_v60 = vld [vmem:[#allocation2 + $0xbe4] ss:$8 sps:$4 sm:$0xff]  }
 0x146   :  { %4303 = vmatprep.subr.bf16.mxu0 %v6216_v61  ;;  %v6307_v61 = vld [vmem:[#allocation2 + $0xbe0] ss:$8 sps:$4 sm:$0xff]  }
 0x147   :  { %4345 = vmatpush2.bf16.msra.mxu1 %v6211_v62  ;;  %v6312_v62 = vld [vmem:[#allocation2 + $0xad4] ss:$8 sps:$4 sm:$0xff]  }
 0x148   :  { %4346 = vmatprep.subr.bf16.mxu1 %v6219_v63  ;;  %v6310_v63 = vld [vmem:[#allocation2 + $0xad0] ss:$8 sps:$4 sm:$0xff]  }
 0x149   :  { %4304 = vmatpush2.bf16.msra.mxu0 %v6214_v0  ;;  %v6315_v0 = vld [vmem:[#allocation2 + $0xbd4] ss:$8 sps:$4 sm:$0xff]  }
 0x14a   :  { %4305 = vmatprep.subr.bf16.mxu0 %v6222_v1  ;;  %v6313_v1 = vld [vmem:[#allocation2 + $0xbd0] ss:$8 sps:$4 sm:$0xff]  }
 0x14b   :  { %4347 = vmatpush2.bf16.msra.mxu1 %v6217_v2  ;;  %v6318_v2 = vld [vmem:[#allocation2 + $0xac4] ss:$8 sps:$4 sm:$0xff]  }
 0x14c   :  { %4348 = vmatprep.subr.bf16.mxu1 %v6225_v3  ;;  %v6316_v3 = vld [vmem:[#allocation2 + $0xac0] ss:$8 sps:$4 sm:$0xff]  }
 0x14d   :  { %4306 = vmatpush2.bf16.msra.mxu0 %v6220_v4  ;;  %v6321_v4 = vld [vmem:[#allocation2 + $0xbc4] ss:$8 sps:$4 sm:$0xff]  }
 0x14e   :  { %4307 = vmatprep.subr.bf16.mxu0 %v6228_v5  ;;  %v6319_v5 = vld [vmem:[#allocation2 + $0xbc0] ss:$8 sps:$4 sm:$0xff]  }
 0x14f   :  { %4349 = vmatpush2.bf16.msra.mxu1 %v6223_v6  ;;  %v6324_v6 = vld [vmem:[#allocation2 + $0xab4] ss:$8 sps:$4 sm:$0xff]  }
 0x150   :  { %4350 = vmatprep.subr.bf16.mxu1 %v6231_v8  ;;  %v6327_v8 = vld [vmem:[#allocation2 + $0xbb4] ss:$8 sps:$4 sm:$0xff]  }
 0x151   :  { %4308 = vmatpush2.bf16.msra.mxu0 %v6226_v7  ;;  %v6322_v7 = vld [vmem:[#allocation2 + $0xab0] ss:$8 sps:$4 sm:$0xff]  }
 0x152   :  { %4309 = vmatprep.subr.bf16.mxu0 %v6234_v10  ;;  %v6330_v10 = vld [vmem:[#allocation2 + $0xaa4] ss:$8 sps:$4 sm:$0xff]  }
 0x153   :  { %4351 = vmatpush2.bf16.msra.mxu1 %v6229_v9  ;;  %v6325_v9 = vld [vmem:[#allocation2 + $0xbb0] ss:$8 sps:$4 sm:$0xff]  }
 0x154   :  { %4352 = vmatprep.subr.bf16.mxu1 %v6237_v12  ;;  %v6333_v12 = vld [vmem:[#allocation2 + $0xba4] ss:$8 sps:$4 sm:$0xff]  }
 0x155   :  { %4310 = vmatpush2.bf16.msra.mxu0 %v6232_v11  ;;  %v6328_v11 = vld [vmem:[#allocation2 + $0xaa0] ss:$8 sps:$4 sm:$0xff]  }
 0x156   :  { %4311 = vmatprep.subr.bf16.mxu0 %v6240_v14  ;;  %v6336_v14 = vld [vmem:[#allocation2 + $0xa94] ss:$8 sps:$4 sm:$0xff]  }
 0x157   :  { %4353 = vmatpush2.bf16.msra.mxu1 %v6235_v13  ;;  %v6331_v13 = vld [vmem:[#allocation2 + $0xba0] ss:$8 sps:$4 sm:$0xff]  }
 0x158   :  { %4354 = vmatprep.subr.bf16.mxu1 %v6243_v16  ;;  %v6339_v16 = vld [vmem:[#allocation2 + $0xb94] ss:$8 sps:$4 sm:$0xff]  }
 0x159   :  { %4312 = vmatpush2.bf16.msra.mxu0 %v6238_v15  ;;  %v6334_v15 = vld [vmem:[#allocation2 + $0xa90] ss:$8 sps:$4 sm:$0xff]  }
 0x15a   :  { %4367 = vmatprep.subr.bf16.mxu0 %v6249_v18  ;;  %v6342_v18 = vld [vmem:[#allocation2 + $0xa84] ss:$8 sps:$4 sm:$0xff]  }
 0x15b   :  { %4355 = vmatpush2.bf16.msra.mxu1 %v6241_v17  ;;  %v6337_v17 = vld [vmem:[#allocation2 + $0xb90] ss:$8 sps:$4 sm:$0xff]  }
 0x15c   :  { %4314 = vmatmul.mubr.bf16.vlgmr.msra.gmra.mxu0 %v6244_v19  ;;  %4410 = vmatprep.subr.bf16.mxu1 %v6255_v20  ;;  %v6340_v19 = vld [vmem:[#allocation2 + $0xa80] ss:$8 sps:$4 sm:$0xff]   ;;  %v6345_v20 = vld [vmem:[#allocation2 + $0xb84] ss:$8 sps:$4 sm:$0xff]  }
 0x15d   :  { %4368 = vmatpush1.bf16.msra.mxu0 %v6247_v21  ;;  %4399 = vmatprep.mubr.bf16.mxu0 %v6348_v23  ;;  %v6343_v21 = vld [vmem:[#allocation2 + $0xb80] ss:$8 sps:$4 sm:$0xff]  }
 0x15e   :  { %4357 = vmatmul.mubr.bf16.vlgmr.msra.gmra.mxu1 %v6250_v22  ;;  %4369 = vmatprep.subr.bf16.mxu0 %v6258_v24  ;;  %v6351_v22 = vld [vmem:[#allocation2 + $0xc74] ss:$8 sps:$4 sm:$0xff]   ;;  %v6346_v23 = vld [vmem:[%s7042_s0 + $0x50] ss:$152 sps:$4 sm:$0xff]  }
 0x15f   :  { %4411 = vmatpush1.bf16.msra.mxu1 %v6253_v25  ;;  %4442 = vmatprep.mubr.bf16.mxu1 %v6354_v26  ;;  %v6357_v24 = vld [vmem:[#allocation2 + $0xd74] ss:$8 sps:$4 sm:$0xff]   ;;  %v6349_v25 = vld [vmem:[#allocation2 + $0xc70] ss:$8 sps:$4 sm:$0xff]  }
 0x160   :  { %4412 = vmatprep.subr.bf16.mxu1 %v6261_v28  ;;  %v6352_v26 = vld [vmem:[%s7042_s0 + $0x58] ss:$152 sps:$4 sm:$0xff]   ;;  %v6360_v28 = vld [vmem:[#allocation2 + $0xc64] ss:$8 sps:$4 sm:$0xff]  }
 0x161   :  { %4370 = vmatpush1.bf16.msra.mxu0 %v6256_v27  ;;  %v6450_v27 = vld [vmem:[%s7042_s0 + $0x64] ss:$152 sps:$4 sm:$0xff]  }
 0x162   :  { %4371 = vmatprep.subr.bf16.mxu0 %v6264_v30  ;;  %v6456_v30 = vld [vmem:[%s7042_s0 + $0x6c] ss:$152 sps:$4 sm:$0xff]  }
 0x163   :  { %4413 = vmatpush1.bf16.msra.mxu1 %v6259_v29  ;;  %v6355_v29 = vld [vmem:[#allocation2 + $0xd70] ss:$8 sps:$4 sm:$0xff]  }
 0x164   :  { %4414 = vmatprep.subr.bf16.mxu1 %v6267_v32  ;;  %v6358_v32 = vld [vmem:[#allocation2 + $0xc60] ss:$8 sps:$4 sm:$0xff]  }
 0x165   :  { %4372 = vmatpush1.bf16.msra.mxu0 %v6262_v31  ;;  %v6363_v31 = vld [vmem:[#allocation2 + $0xd64] ss:$8 sps:$4 sm:$0xff]  }
 0x166   :  { %4373 = vmatprep.subr.bf16.mxu0 %v6270_v34  ;;  %v6361_v34 = vld [vmem:[#allocation2 + $0xd60] ss:$8 sps:$4 sm:$0xff]  }
 0x167   :  { %4415 = vmatpush1.bf16.msra.mxu1 %v6265_v33  ;;  %v6366_v33 = vld [vmem:[#allocation2 + $0xc54] ss:$8 sps:$4 sm:$0xff]  }
 0x168   :  { %4416 = vmatprep.subr.bf16.mxu1 %v6273_v36  ;;  %v6364_v36 = vld [vmem:[#allocation2 + $0xc50] ss:$8 sps:$4 sm:$0xff]  }
 0x169   :  { %4374 = vmatpush1.bf16.msra.mxu0 %v6268_v35  ;;  %v6369_v35 = vld [vmem:[#allocation2 + $0xd54] ss:$8 sps:$4 sm:$0xff]  }
 0x16a   :  { %4375 = vmatprep.subr.bf16.mxu0 %v6276_v38  ;;  %v6367_v38 = vld [vmem:[#allocation2 + $0xd50] ss:$8 sps:$4 sm:$0xff]  }
 0x16b   :  { %4417 = vmatpush1.bf16.msra.mxu1 %v6271_v37  ;;  %v6372_v37 = vld [vmem:[#allocation2 + $0xc44] ss:$8 sps:$4 sm:$0xff]  }
 0x16c   :  { %4418 = vmatprep.subr.bf16.mxu1 %v6279_v40  ;;  %v6370_v40 = vld [vmem:[#allocation2 + $0xc40] ss:$8 sps:$4 sm:$0xff]  }
 0x16d   :  { %4376 = vmatpush1.bf16.msra.mxu0 %v6274_v39  ;;  %v6375_v39 = vld [vmem:[#allocation2 + $0xd44] ss:$8 sps:$4 sm:$0xff]  }
 0x16e   :  { %4377 = vmatprep.subr.bf16.mxu0 %v6282_v42  ;;  %v6373_v42 = vld [vmem:[#allocation2 + $0xd40] ss:$8 sps:$4 sm:$0xff]  }
 0x16f   :  { %4419 = vmatpush1.bf16.msra.mxu1 %v6277_v41  ;;  %v6378_v41 = vld [vmem:[#allocation2 + $0xc34] ss:$8 sps:$4 sm:$0xff]  }
 0x170   :  { %4420 = vmatprep.subr.bf16.mxu1 %v6285_v44  ;;  %v6376_v44 = vld [vmem:[#allocation2 + $0xc30] ss:$8 sps:$4 sm:$0xff]  }
 0x171   :  { %4378 = vmatpush1.bf16.msra.mxu0 %v6280_v43  ;;  %v6381_v43 = vld [vmem:[#allocation2 + $0xd34] ss:$8 sps:$4 sm:$0xff]  }
 0x172   :  { %4379 = vmatprep.subr.bf16.mxu0 %v6288_v46  ;;  %v6379_v46 = vld [vmem:[#allocation2 + $0xd30] ss:$8 sps:$4 sm:$0xff]  }
 0x173   :  { %4421 = vmatpush1.bf16.msra.mxu1 %v6283_v45  ;;  %v6384_v45 = vld [vmem:[#allocation2 + $0xc24] ss:$8 sps:$4 sm:$0xff]  }
 0x174   :  { %4422 = vmatprep.subr.bf16.mxu1 %v6291_v48  ;;  %v6382_v48 = vld [vmem:[#allocation2 + $0xc20] ss:$8 sps:$4 sm:$0xff]  }
 0x175   :  { %4380 = vmatpush1.bf16.msra.mxu0 %v6286_v47  ;;  %v6387_v47 = vld [vmem:[#allocation2 + $0xd24] ss:$8 sps:$4 sm:$0xff]  }
 0x176   :  { %4381 = vmatprep.subr.bf16.mxu0 %v6294_v50  ;;  %v6385_v50 = vld [vmem:[#allocation2 + $0xd20] ss:$8 sps:$4 sm:$0xff]  }
 0x177   :  { %4423 = vmatpush1.bf16.msra.mxu1 %v6289_v49  ;;  %v6390_v49 = vld [vmem:[#allocation2 + $0xc14] ss:$8 sps:$4 sm:$0xff]  }
 0x178   :  { %4424 = vmatprep.subr.bf16.mxu1 %v6297_v52  ;;  %v6388_v52 = vld [vmem:[#allocation2 + $0xc10] ss:$8 sps:$4 sm:$0xff]  }
 0x179   :  { %4382 = vmatpush1.bf16.msra.mxu0 %v6292_v51  ;;  %v6393_v51 = vld [vmem:[#allocation2 + $0xd14] ss:$8 sps:$4 sm:$0xff]  }
 0x17a   :  { %4383 = vmatprep.subr.bf16.mxu0 %v6300_v54  ;;  %v6391_v54 = vld [vmem:[#allocation2 + $0xd10] ss:$8 sps:$4 sm:$0xff]  }
 0x17b   :  { %4425 = vmatpush1.bf16.msra.mxu1 %v6295_v53  ;;  %v6396_v53 = vld [vmem:[#allocation2 + $0xc04] ss:$8 sps:$4 sm:$0xff]  }
 0x17c   :  { %4426 = vmatprep.subr.bf16.mxu1 %v6303_v56  ;;  %v6394_v56 = vld [vmem:[#allocation2 + $0xc00] ss:$8 sps:$4 sm:$0xff]  }
 0x17d   :  { %4384 = vmatpush2.bf16.msra.mxu0 %v6298_v55  ;;  %v6399_v55 = vld [vmem:[#allocation2 + $0xd04] ss:$8 sps:$4 sm:$0xff]  }
 0x17e   :  { %4385 = vmatprep.subr.bf16.mxu0 %v6306_v58  ;;  %v6397_v58 = vld [vmem:[#allocation2 + $0xd00] ss:$8 sps:$4 sm:$0xff]  }
 0x17f   :  { %4427 = vmatpush2.bf16.msra.mxu1 %v6301_v57  ;;  %v6402_v57 = vld [vmem:[#allocation2 + $0xcf4] ss:$8 sps:$4 sm:$0xff]  }
 0x180   :  { %4428 = vmatprep.subr.bf16.mxu1 %v6309_v60  ;;  %v6400_v60 = vld [vmem:[#allocation2 + $0xcf0] ss:$8 sps:$4 sm:$0xff]  }
 0x181   :  { %4386 = vmatpush2.bf16.msra.mxu0 %v6304_v59  ;;  %v6405_v59 = vld [vmem:[#allocation2 + $0xdf4] ss:$8 sps:$4 sm:$0xff]  }
 0x182   :  { %4387 = vmatprep.subr.bf16.mxu0 %v6312_v62  ;;  %v6403_v62 = vld [vmem:[#allocation2 + $0xdf0] ss:$8 sps:$4 sm:$0xff]  }
 0x183   :  { %4429 = vmatpush2.bf16.msra.mxu1 %v6307_v61  ;;  %v6408_v61 = vld [vmem:[#allocation2 + $0xce4] ss:$8 sps:$4 sm:$0xff]  }
 0x184   :  { %4430 = vmatprep.subr.bf16.mxu1 %v6315_v0  ;;  %v6406_v0 = vld [vmem:[#allocation2 + $0xce0] ss:$8 sps:$4 sm:$0xff]  }
 0x185   :  { %4388 = vmatpush2.bf16.msra.mxu0 %v6310_v63  ;;  %v6411_v63 = vld [vmem:[#allocation2 + $0xde4] ss:$8 sps:$4 sm:$0xff]  }
 0x186   :  { %4389 = vmatprep.subr.bf16.mxu0 %v6318_v2  ;;  %v6409_v2 = vld [vmem:[#allocation2 + $0xde0] ss:$8 sps:$4 sm:$0xff]  }
 0x187   :  { %4431 = vmatpush2.bf16.msra.mxu1 %v6313_v1  ;;  %v6414_v1 = vld [vmem:[#allocation2 + $0xcd4] ss:$8 sps:$4 sm:$0xff]  }
 0x188   :  { %4432 = vmatprep.subr.bf16.mxu1 %v6321_v4  ;;  %v6412_v4 = vld [vmem:[#allocation2 + $0xcd0] ss:$8 sps:$4 sm:$0xff]  }
 0x189   :  { %4390 = vmatpush2.bf16.msra.mxu0 %v6316_v3  ;;  %v6417_v3 = vld [vmem:[#allocation2 + $0xdd4] ss:$8 sps:$4 sm:$0xff]  }
 0x18a   :  { %4391 = vmatprep.subr.bf16.mxu0 %v6324_v6  ;;  %v6415_v6 = vld [vmem:[#allocation2 + $0xdd0] ss:$8 sps:$4 sm:$0xff]  }
 0x18b   :  { %4433 = vmatpush2.bf16.msra.mxu1 %v6319_v5  ;;  %v6420_v5 = vld [vmem:[#allocation2 + $0xcc4] ss:$8 sps:$4 sm:$0xff]  }
 0x18c   :  { %4434 = vmatprep.subr.bf16.mxu1 %v6327_v8  ;;  %v6418_v8 = vld [vmem:[#allocation2 + $0xcc0] ss:$8 sps:$4 sm:$0xff]  }
 0x18d   :  { %4392 = vmatpush2.bf16.msra.mxu0 %v6322_v7  ;;  %v6423_v7 = vld [vmem:[#allocation2 + $0xdc4] ss:$8 sps:$4 sm:$0xff]  }
 0x18e   :  { %4393 = vmatprep.subr.bf16.mxu0 %v6330_v10  ;;  %v6421_v10 = vld [vmem:[#allocation2 + $0xdc0] ss:$8 sps:$4 sm:$0xff]  }
 0x18f   :  { %4435 = vmatpush2.bf16.msra.mxu1 %v6325_v9  ;;  %v6426_v9 = vld [vmem:[#allocation2 + $0xcb4] ss:$8 sps:$4 sm:$0xff]  }
 0x190   :  { %4436 = vmatprep.subr.bf16.mxu1 %v6333_v12  ;;  %v6424_v12 = vld [vmem:[#allocation2 + $0xcb0] ss:$8 sps:$4 sm:$0xff]  }
 0x191   :  { %4394 = vmatpush2.bf16.msra.mxu0 %v6328_v11  ;;  %v6429_v11 = vld [vmem:[#allocation2 + $0xdb4] ss:$8 sps:$4 sm:$0xff]  }
 0x192   :  { %4395 = vmatprep.subr.bf16.mxu0 %v6336_v14  ;;  %v6427_v14 = vld [vmem:[#allocation2 + $0xdb0] ss:$8 sps:$4 sm:$0xff]  }
 0x193   :  { %4437 = vmatpush2.bf16.msra.mxu1 %v6331_v13  ;;  %v6432_v13 = vld [vmem:[#allocation2 + $0xca4] ss:$8 sps:$4 sm:$0xff]  }
 0x194   :  { %4438 = vmatprep.subr.bf16.mxu1 %v6339_v16  ;;  %v6430_v16 = vld [vmem:[#allocation2 + $0xca0] ss:$8 sps:$4 sm:$0xff]  }
 0x195   :  { %4396 = vmatpush2.bf16.msra.mxu0 %v6334_v15  ;;  %v6435_v15 = vld [vmem:[#allocation2 + $0xda4] ss:$8 sps:$4 sm:$0xff]  }
 0x196   :  { %4397 = vmatprep.subr.bf16.mxu0 %v6342_v18  ;;  %v6433_v18 = vld [vmem:[#allocation2 + $0xda0] ss:$8 sps:$4 sm:$0xff]  }
 0x197   :  { %4439 = vmatpush2.bf16.msra.mxu1 %v6337_v17  ;;  %v6438_v17 = vld [vmem:[#allocation2 + $0xc94] ss:$8 sps:$4 sm:$0xff]  }
 0x198   :  { %4440 = vmatprep.subr.bf16.mxu1 %v6345_v20  ;;  %v6436_v20 = vld [vmem:[#allocation2 + $0xc90] ss:$8 sps:$4 sm:$0xff]  }
 0x199   :  { %4398 = vmatpush2.bf16.msra.mxu0 %v6340_v19  ;;  %v6441_v19 = vld [vmem:[#allocation2 + $0xd94] ss:$8 sps:$4 sm:$0xff]  }
 0x19a   :  { %4453 = vmatprep.subr.bf16.mxu0 %v6351_v22  ;;  %v6439_v22 = vld [vmem:[#allocation2 + $0xd90] ss:$8 sps:$4 sm:$0xff]  }
 0x19b   :  { %4441 = vmatpush2.bf16.msra.mxu1 %v6343_v21  ;;  %v6444_v21 = vld [vmem:[#allocation2 + $0xc84] ss:$8 sps:$4 sm:$0xff]  }
 0x19c   :  { %4400 = vmatmul.mubr.bf16.vlgmr.msra.gmra.mxu0 %v6346_v23  ;;  %4496 = vmatprep.subr.bf16.mxu1 %v6357_v24  ;;  %v6447_v23 = vld [vmem:[#allocation2 + $0xd84] ss:$8 sps:$4 sm:$0xff]   ;;  %v6442_v24 = vld [vmem:[#allocation2 + $0xc80] ss:$8 sps:$4 sm:$0xff]  }
 0x19d   :  { %4454 = vmatpush1.bf16.msra.mxu0 %v6349_v25  ;;  %4485 = vmatprep.mubr.bf16.mxu0 %v6450_v27  ;;  %v6453_v25 = vld [vmem:[#allocation2 + $0xe74] ss:$8 sps:$4 sm:$0xff]   ;;  %v6448_v27 = vld [vmem:[%s7042_s0 + $0x60] ss:$152 sps:$4 sm:$0xff]  }
 0x19e   :  { %4443 = vmatmul.mubr.bf16.vlgmr.msra.gmra.mxu1 %v6352_v26  ;;  %4455 = vmatprep.subr.bf16.mxu0 %v6360_v28  ;;  %v6445_v26 = vld [vmem:[#allocation2 + $0xd80] ss:$8 sps:$4 sm:$0xff]   ;;  %v6459_v28 = vld [vmem:[#allocation2 + $0xf74] ss:$8 sps:$4 sm:$0xff]  }
 0x19f   :  { %4497 = vmatpush1.bf16.msra.mxu1 %v6355_v29  ;;  %4528 = vmatprep.mubr.bf16.mxu1 %v6456_v30  ;;  %v6451_v29 = vld [vmem:[#allocation2 + $0xe70] ss:$8 sps:$4 sm:$0xff]   ;;  %v6552_v30 = vld [vmem:[%s7042_s0 + $0x74] ss:$152 sps:$4 sm:$0xff]  }
 0x1a0   :  { %4498 = vmatprep.subr.bf16.mxu1 %v6363_v31  ;;  %v6454_v31 = vld [vmem:[%s7042_s0 + $0x68] ss:$152 sps:$4 sm:$0xff]  }
 0x1a1   :  { %4456 = vmatpush1.bf16.msra.mxu0 %v6358_v32  ;;  %v6462_v32 = vld [vmem:[#allocation2 + $0xe64] ss:$8 sps:$4 sm:$0xff]  }
 0x1a2   :  { %4457 = vmatprep.subr.bf16.mxu0 %v6366_v33  ;;  %v6457_v33 = vld [vmem:[#allocation2 + $0xf70] ss:$8 sps:$4 sm:$0xff]  }
 0x1a3   :  { %4499 = vmatpush1.bf16.msra.mxu1 %v6361_v34  ;;  %v6558_v34 = vld [vmem:[%s7042_s0 + $0x7c] ss:$152 sps:$4 sm:$0xff]  }
 0x1a4   :  { %4500 = vmatprep.subr.bf16.mxu1 %v6369_v35  ;;  %v6465_v35 = vld [vmem:[#allocation2 + $0xf64] ss:$8 sps:$4 sm:$0xff]  }
 0x1a5   :  { %4458 = vmatpush1.bf16.msra.mxu0 %v6364_v36  ;;  %v6460_v36 = vld [vmem:[#allocation2 + $0xe60] ss:$8 sps:$4 sm:$0xff]  }
 0x1a6   :  { %4459 = vmatprep.subr.bf16.mxu0 %v6372_v37  ;;  %v6468_v37 = vld [vmem:[#allocation2 + $0xe54] ss:$8 sps:$4 sm:$0xff]  }
 0x1a7   :  { %4501 = vmatpush1.bf16.msra.mxu1 %v6367_v38  ;;  %v6463_v38 = vld [vmem:[#allocation2 + $0xf60] ss:$8 sps:$4 sm:$0xff]  }
 0x1a8   :  { %4502 = vmatprep.subr.bf16.mxu1 %v6375_v39  ;;  %v6471_v39 = vld [vmem:[#allocation2 + $0xf54] ss:$8 sps:$4 sm:$0xff]  }
 0x1a9   :  { %4460 = vmatpush1.bf16.msra.mxu0 %v6370_v40  ;;  %v6466_v40 = vld [vmem:[#allocation2 + $0xe50] ss:$8 sps:$4 sm:$0xff]  }
 0x1aa   :  { %4461 = vmatprep.subr.bf16.mxu0 %v6378_v41  ;;  %v6474_v41 = vld [vmem:[#allocation2 + $0xe44] ss:$8 sps:$4 sm:$0xff]  }
 0x1ab   :  { %4503 = vmatpush1.bf16.msra.mxu1 %v6373_v42  ;;  %v6469_v42 = vld [vmem:[#allocation2 + $0xf50] ss:$8 sps:$4 sm:$0xff]  }
 0x1ac   :  { %4504 = vmatprep.subr.bf16.mxu1 %v6381_v43  ;;  %v6477_v43 = vld [vmem:[#allocation2 + $0xf44] ss:$8 sps:$4 sm:$0xff]  }
 0x1ad   :  { %4462 = vmatpush1.bf16.msra.mxu0 %v6376_v44  ;;  %v6472_v44 = vld [vmem:[#allocation2 + $0xe40] ss:$8 sps:$4 sm:$0xff]  }
 0x1ae   :  { %4463 = vmatprep.subr.bf16.mxu0 %v6384_v45  ;;  %v6480_v45 = vld [vmem:[#allocation2 + $0xe34] ss:$8 sps:$4 sm:$0xff]  }
 0x1af   :  { %4505 = vmatpush1.bf16.msra.mxu1 %v6379_v46  ;;  %v6475_v46 = vld [vmem:[#allocation2 + $0xf40] ss:$8 sps:$4 sm:$0xff]  }
 0x1b0   :  { %4506 = vmatprep.subr.bf16.mxu1 %v6387_v47  ;;  %v6483_v47 = vld [vmem:[#allocation2 + $0xf34] ss:$8 sps:$4 sm:$0xff]  }
 0x1b1   :  { %4464 = vmatpush1.bf16.msra.mxu0 %v6382_v48  ;;  %v6478_v48 = vld [vmem:[#allocation2 + $0xe30] ss:$8 sps:$4 sm:$0xff]  }
 0x1b2   :  { %4465 = vmatprep.subr.bf16.mxu0 %v6390_v49  ;;  %v6486_v49 = vld [vmem:[#allocation2 + $0xe24] ss:$8 sps:$4 sm:$0xff]  }
 0x1b3   :  { %4507 = vmatpush1.bf16.msra.mxu1 %v6385_v50  ;;  %v6481_v50 = vld [vmem:[#allocation2 + $0xf30] ss:$8 sps:$4 sm:$0xff]  }
 0x1b4   :  { %4508 = vmatprep.subr.bf16.mxu1 %v6393_v51  ;;  %v6489_v51 = vld [vmem:[#allocation2 + $0xf24] ss:$8 sps:$4 sm:$0xff]  }
 0x1b5   :  { %4466 = vmatpush1.bf16.msra.mxu0 %v6388_v52  ;;  %v6484_v52 = vld [vmem:[#allocation2 + $0xe20] ss:$8 sps:$4 sm:$0xff]  }
 0x1b6   :  { %4467 = vmatprep.subr.bf16.mxu0 %v6396_v53  ;;  %v6492_v53 = vld [vmem:[#allocation2 + $0xe14] ss:$8 sps:$4 sm:$0xff]  }
 0x1b7   :  { %4509 = vmatpush1.bf16.msra.mxu1 %v6391_v54  ;;  %v6487_v54 = vld [vmem:[#allocation2 + $0xf20] ss:$8 sps:$4 sm:$0xff]  }
 0x1b8   :  { %4510 = vmatprep.subr.bf16.mxu1 %v6399_v55  ;;  %v6495_v55 = vld [vmem:[#allocation2 + $0xf14] ss:$8 sps:$4 sm:$0xff]  }
 0x1b9   :  { %4468 = vmatpush1.bf16.msra.mxu0 %v6394_v56  ;;  %v6490_v56 = vld [vmem:[#allocation2 + $0xe10] ss:$8 sps:$4 sm:$0xff]  }
 0x1ba   :  { %4469 = vmatprep.subr.bf16.mxu0 %v6402_v57  ;;  %v6498_v57 = vld [vmem:[#allocation2 + $0xe04] ss:$8 sps:$4 sm:$0xff]  }
 0x1bb   :  { %4511 = vmatpush1.bf16.msra.mxu1 %v6397_v58  ;;  %v6493_v58 = vld [vmem:[#allocation2 + $0xf10] ss:$8 sps:$4 sm:$0xff]  }
 0x1bc   :  { %4512 = vmatprep.subr.bf16.mxu1 %v6405_v59  ;;  %v6501_v59 = vld [vmem:[#allocation2 + $0xf04] ss:$8 sps:$4 sm:$0xff]  }
 0x1bd   :  { %4470 = vmatpush2.bf16.msra.mxu0 %v6400_v60  ;;  %v6496_v60 = vld [vmem:[#allocation2 + $0xe00] ss:$8 sps:$4 sm:$0xff]  }
 0x1be   :  { %4471 = vmatprep.subr.bf16.mxu0 %v6408_v61  ;;  %v6504_v61 = vld [vmem:[#allocation2 + $0xef4] ss:$8 sps:$4 sm:$0xff]  }
 0x1bf   :  { %4513 = vmatpush2.bf16.msra.mxu1 %v6403_v62  ;;  %v6499_v62 = vld [vmem:[#allocation2 + $0xf00] ss:$8 sps:$4 sm:$0xff]  }
 0x1c0   :  { %4514 = vmatprep.subr.bf16.mxu1 %v6411_v63  ;;  %v6507_v63 = vld [vmem:[#allocation2 + $0xff4] ss:$8 sps:$4 sm:$0xff]  }
 0x1c1   :  { %4472 = vmatpush2.bf16.msra.mxu0 %v6406_v0  ;;  %v6502_v0 = vld [vmem:[#allocation2 + $0xef0] ss:$8 sps:$4 sm:$0xff]  }
 0x1c2   :  { %4473 = vmatprep.subr.bf16.mxu0 %v6414_v1  ;;  %v6510_v1 = vld [vmem:[#allocation2 + $0xee4] ss:$8 sps:$4 sm:$0xff]  }
 0x1c3   :  { %4515 = vmatpush2.bf16.msra.mxu1 %v6409_v2  ;;  %v6505_v2 = vld [vmem:[#allocation2 + $0xff0] ss:$8 sps:$4 sm:$0xff]  }
 0x1c4   :  { %4516 = vmatprep.subr.bf16.mxu1 %v6417_v3  ;;  %v6513_v3 = vld [vmem:[#allocation2 + $0xfe4] ss:$8 sps:$4 sm:$0xff]  }
 0x1c5   :  { %4474 = vmatpush2.bf16.msra.mxu0 %v6412_v4  ;;  %v6508_v4 = vld [vmem:[#allocation2 + $0xee0] ss:$8 sps:$4 sm:$0xff]  }
 0x1c6   :  { %4475 = vmatprep.subr.bf16.mxu0 %v6420_v5  ;;  %v6516_v5 = vld [vmem:[#allocation2 + $0xed4] ss:$8 sps:$4 sm:$0xff]  }
 0x1c7   :  { %4517 = vmatpush2.bf16.msra.mxu1 %v6415_v6  ;;  %v6511_v6 = vld [vmem:[#allocation2 + $0xfe0] ss:$8 sps:$4 sm:$0xff]  }
 0x1c8   :  { %4518 = vmatprep.subr.bf16.mxu1 %v6423_v7  ;;  %v6519_v7 = vld [vmem:[#allocation2 + $0xfd4] ss:$8 sps:$4 sm:$0xff]  }
 0x1c9   :  { %4476 = vmatpush2.bf16.msra.mxu0 %v6418_v8  ;;  %v6514_v8 = vld [vmem:[#allocation2 + $0xed0] ss:$8 sps:$4 sm:$0xff]  }
 0x1ca   :  { %4477 = vmatprep.subr.bf16.mxu0 %v6426_v9  ;;  %v6522_v9 = vld [vmem:[#allocation2 + $0xec4] ss:$8 sps:$4 sm:$0xff]  }
 0x1cb   :  { %4519 = vmatpush2.bf16.msra.mxu1 %v6421_v10  ;;  %v6517_v10 = vld [vmem:[#allocation2 + $0xfd0] ss:$8 sps:$4 sm:$0xff]  }
 0x1cc   :  { %4520 = vmatprep.subr.bf16.mxu1 %v6429_v11  ;;  %v6525_v11 = vld [vmem:[#allocation2 + $0xfc4] ss:$8 sps:$4 sm:$0xff]  }
 0x1cd   :  { %4478 = vmatpush2.bf16.msra.mxu0 %v6424_v12  ;;  %v6520_v12 = vld [vmem:[#allocation2 + $0xec0] ss:$8 sps:$4 sm:$0xff]  }
 0x1ce   :  { %4479 = vmatprep.subr.bf16.mxu0 %v6432_v13  ;;  %v6528_v13 = vld [vmem:[#allocation2 + $0xeb4] ss:$8 sps:$4 sm:$0xff]  }
 0x1cf   :  { %4521 = vmatpush2.bf16.msra.mxu1 %v6427_v14  ;;  %v6523_v14 = vld [vmem:[#allocation2 + $0xfc0] ss:$8 sps:$4 sm:$0xff]  }
 0x1d0   :  { %4522 = vmatprep.subr.bf16.mxu1 %v6435_v15  ;;  %v6531_v15 = vld [vmem:[#allocation2 + $0xfb4] ss:$8 sps:$4 sm:$0xff]  }
 0x1d1   :  { %4480 = vmatpush2.bf16.msra.mxu0 %v6430_v16  ;;  %v6526_v16 = vld [vmem:[#allocation2 + $0xeb0] ss:$8 sps:$4 sm:$0xff]  }
 0x1d2   :  { %4481 = vmatprep.subr.bf16.mxu0 %v6438_v17  ;;  %v6534_v17 = vld [vmem:[#allocation2 + $0xea4] ss:$8 sps:$4 sm:$0xff]  }
 0x1d3   :  { %4523 = vmatpush2.bf16.msra.mxu1 %v6433_v18  ;;  %v6529_v18 = vld [vmem:[#allocation2 + $0xfb0] ss:$8 sps:$4 sm:$0xff]  }
 0x1d4   :  { %4524 = vmatprep.subr.bf16.mxu1 %v6441_v19  ;;  %v6537_v19 = vld [vmem:[#allocation2 + $0xfa4] ss:$8 sps:$4 sm:$0xff]  }
 0x1d5   :  { %4482 = vmatpush2.bf16.msra.mxu0 %v6436_v20  ;;  %v6532_v20 = vld [vmem:[#allocation2 + $0xea0] ss:$8 sps:$4 sm:$0xff]  }
 0x1d6   :  { %4483 = vmatprep.subr.bf16.mxu0 %v6444_v21  ;;  %v6540_v21 = vld [vmem:[#allocation2 + $0xe94] ss:$8 sps:$4 sm:$0xff]  }
 0x1d7   :  { %4525 = vmatpush2.bf16.msra.mxu1 %v6439_v22  ;;  %v6535_v22 = vld [vmem:[#allocation2 + $0xfa0] ss:$8 sps:$4 sm:$0xff]  }
 0x1d8   :  { %4526 = vmatprep.subr.bf16.mxu1 %v6447_v23  ;;  %v6543_v23 = vld [vmem:[#allocation2 + $0xf94] ss:$8 sps:$4 sm:$0xff]  }
 0x1d9   :  { %4484 = vmatpush2.bf16.msra.mxu0 %v6442_v24  ;;  %v6538_v24 = vld [vmem:[#allocation2 + $0xe90] ss:$8 sps:$4 sm:$0xff]  }
 0x1da   :  { %4539 = vmatprep.subr.bf16.mxu0 %v6453_v25  ;;  %v6546_v25 = vld [vmem:[#allocation2 + $0xe84] ss:$8 sps:$4 sm:$0xff]  }
 0x1db   :  { %4527 = vmatpush2.bf16.msra.mxu1 %v6445_v26  ;;  %v6541_v26 = vld [vmem:[#allocation2 + $0xf90] ss:$8 sps:$4 sm:$0xff]  }
 0x1dc   :  { %4486 = vmatmul.mubr.bf16.vlgmr.msra.gmra.mxu0 %v6448_v27  ;;  %4582 = vmatprep.subr.bf16.mxu1 %v6459_v28  ;;  %v6549_v27 = vld [vmem:[#allocation2 + $0xf84] ss:$8 sps:$4 sm:$0xff]   ;;  %v6544_v28 = vld [vmem:[#allocation2 + $0xe80] ss:$8 sps:$4 sm:$0xff]  }
 0x1dd   :  { %4540 = vmatpush1.bf16.msra.mxu0 %v6451_v29  ;;  %4571 = vmatprep.mubr.bf16.mxu0 %v6552_v30  ;;  %v6555_v29 = vld [vmem:[#allocation2 + $0x1074] ss:$8 sps:$4 sm:$0xff]   ;;  %v6547_v30 = vld [vmem:[#allocation2 + $0xf80] ss:$8 sps:$4 sm:$0xff]  }
 0x1de   :  { %4529 = vmatmul.mubr.bf16.vlgmr.msra.gmra.mxu1 %v6454_v31  ;;  %4541 = vmatprep.subr.bf16.mxu0 %v6462_v32  ;;  %v6550_v31 = vld [vmem:[%s7042_s0 + $0x70] ss:$152 sps:$4 sm:$0xff]   ;;  %v6561_v32 = vld [vmem:[#allocation2 + $0x1174] ss:$8 sps:$4 sm:$0xff]  }
 0x1df   :  { %4583 = vmatpush1.bf16.msra.mxu1 %v6457_v33  ;;  %4614 = vmatprep.mubr.bf16.mxu1 %v6558_v34  ;;  %v6553_v33 = vld [vmem:[#allocation2 + $0x1070] ss:$8 sps:$4 sm:$0xff]   ;;  %v6654_v34 = vld [vmem:[%s7042_s0 + $0x84] ss:$152 sps:$4 sm:$0xff]  }
 0x1e0   :  { %4584 = vmatprep.subr.bf16.mxu1 %v6465_v35  ;;  %v6556_v35 = vld [vmem:[%s7042_s0 + $0x78] ss:$152 sps:$4 sm:$0xff]  }
 0x1e1   :  { %4542 = vmatpush1.bf16.msra.mxu0 %v6460_v36  ;;  %v6564_v36 = vld [vmem:[#allocation2 + $0x1064] ss:$8 sps:$4 sm:$0xff]  }
 0x1e2   :  { %4543 = vmatprep.subr.bf16.mxu0 %v6468_v37  ;;  %v6559_v37 = vld [vmem:[#allocation2 + $0x1170] ss:$8 sps:$4 sm:$0xff]  }
 0x1e3   :  { %4585 = vmatpush1.bf16.msra.mxu1 %v6463_v38  ;;  %v6660_v38 = vld [vmem:[%s7042_s0 + $0x8c] ss:$152 sps:$4 sm:$0xff]  }
 0x1e4   :  { %4586 = vmatprep.subr.bf16.mxu1 %v6471_v39  ;;  %v6567_v39 = vld [vmem:[#allocation2 + $0x1164] ss:$8 sps:$4 sm:$0xff]  }
 0x1e5   :  { %4544 = vmatpush1.bf16.msra.mxu0 %v6466_v40  ;;  %v6562_v40 = vld [vmem:[#allocation2 + $0x1060] ss:$8 sps:$4 sm:$0xff]  }
 0x1e6   :  { %4545 = vmatprep.subr.bf16.mxu0 %v6474_v41  ;;  %v6570_v41 = vld [vmem:[#allocation2 + $0x1054] ss:$8 sps:$4 sm:$0xff]  }
 0x1e7   :  { %4587 = vmatpush1.bf16.msra.mxu1 %v6469_v42  ;;  %v6565_v42 = vld [vmem:[#allocation2 + $0x1160] ss:$8 sps:$4 sm:$0xff]  }
 0x1e8   :  { %4588 = vmatprep.subr.bf16.mxu1 %v6477_v43  ;;  %v6573_v43 = vld [vmem:[#allocation2 + $0x1154] ss:$8 sps:$4 sm:$0xff]  }
 0x1e9   :  { %4546 = vmatpush1.bf16.msra.mxu0 %v6472_v44  ;;  %v6568_v44 = vld [vmem:[#allocation2 + $0x1050] ss:$8 sps:$4 sm:$0xff]  }
 0x1ea   :  { %4547 = vmatprep.subr.bf16.mxu0 %v6480_v45  ;;  %v6576_v45 = vld [vmem:[#allocation2 + $0x1044] ss:$8 sps:$4 sm:$0xff]  }
 0x1eb   :  { %4589 = vmatpush1.bf16.msra.mxu1 %v6475_v46  ;;  %v6571_v46 = vld [vmem:[#allocation2 + $0x1150] ss:$8 sps:$4 sm:$0xff]  }
 0x1ec   :  { %4590 = vmatprep.subr.bf16.mxu1 %v6483_v47  ;;  %v6579_v47 = vld [vmem:[#allocation2 + $0x1144] ss:$8 sps:$4 sm:$0xff]  }
 0x1ed   :  { %4548 = vmatpush1.bf16.msra.mxu0 %v6478_v48  ;;  %v6574_v48 = vld [vmem:[#allocation2 + $0x1040] ss:$8 sps:$4 sm:$0xff]  }
 0x1ee   :  { %4549 = vmatprep.subr.bf16.mxu0 %v6486_v49  ;;  %v6582_v49 = vld [vmem:[#allocation2 + $0x1034] ss:$8 sps:$4 sm:$0xff]  }
 0x1ef   :  { %4591 = vmatpush1.bf16.msra.mxu1 %v6481_v50  ;;  %v6577_v50 = vld [vmem:[#allocation2 + $0x1140] ss:$8 sps:$4 sm:$0xff]  }
 0x1f0   :  { %4592 = vmatprep.subr.bf16.mxu1 %v6489_v51  ;;  %v6585_v51 = vld [vmem:[#allocation2 + $0x1134] ss:$8 sps:$4 sm:$0xff]  }
 0x1f1   :  { %4550 = vmatpush1.bf16.msra.mxu0 %v6484_v52  ;;  %v6580_v52 = vld [vmem:[#allocation2 + $0x1030] ss:$8 sps:$4 sm:$0xff]  }
 0x1f2   :  { %4551 = vmatprep.subr.bf16.mxu0 %v6492_v53  ;;  %v6588_v53 = vld [vmem:[#allocation2 + $0x1024] ss:$8 sps:$4 sm:$0xff]  }
 0x1f3   :  { %4593 = vmatpush1.bf16.msra.mxu1 %v6487_v54  ;;  %v6583_v54 = vld [vmem:[#allocation2 + $0x1130] ss:$8 sps:$4 sm:$0xff]  }
 0x1f4   :  { %4594 = vmatprep.subr.bf16.mxu1 %v6495_v55  ;;  %v6591_v55 = vld [vmem:[#allocation2 + $0x1124] ss:$8 sps:$4 sm:$0xff]  }
 0x1f5   :  { %4552 = vmatpush1.bf16.msra.mxu0 %v6490_v56  ;;  %v6586_v56 = vld [vmem:[#allocation2 + $0x1020] ss:$8 sps:$4 sm:$0xff]  }
 0x1f6   :  { %4553 = vmatprep.subr.bf16.mxu0 %v6498_v57  ;;  %v6594_v57 = vld [vmem:[#allocation2 + $0x1014] ss:$8 sps:$4 sm:$0xff]  }
 0x1f7   :  { %4595 = vmatpush1.bf16.msra.mxu1 %v6493_v58  ;;  %v6589_v58 = vld [vmem:[#allocation2 + $0x1120] ss:$8 sps:$4 sm:$0xff]  }
 0x1f8   :  { %4596 = vmatprep.subr.bf16.mxu1 %v6501_v59  ;;  %v6597_v59 = vld [vmem:[#allocation2 + $0x1114] ss:$8 sps:$4 sm:$0xff]  }
 0x1f9   :  { %4554 = vmatpush1.bf16.msra.mxu0 %v6496_v60  ;;  %v6592_v60 = vld [vmem:[#allocation2 + $0x1010] ss:$8 sps:$4 sm:$0xff]  }
 0x1fa   :  { %4555 = vmatprep.subr.bf16.mxu0 %v6504_v61  ;;  %v6600_v61 = vld [vmem:[#allocation2 + $0x1004] ss:$8 sps:$4 sm:$0xff]  }
 0x1fb   :  { %4597 = vmatpush1.bf16.msra.mxu1 %v6499_v62  ;;  %v6595_v62 = vld [vmem:[#allocation2 + $0x1110] ss:$8 sps:$4 sm:$0xff]  }
 0x1fc   :  { %4598 = vmatprep.subr.bf16.mxu1 %v6507_v63  ;;  %v6603_v63 = vld [vmem:[#allocation2 + $0x1104] ss:$8 sps:$4 sm:$0xff]  }
 0x1fd   :  { %4556 = vmatpush2.bf16.msra.mxu0 %v6502_v0  ;;  %v6598_v0 = vld [vmem:[#allocation2 + $0x1000] ss:$8 sps:$4 sm:$0xff]  }
 0x1fe   :  { %4557 = vmatprep.subr.bf16.mxu0 %v6510_v1  ;;  %v6606_v1 = vld [vmem:[#allocation2 + $0x10f4] ss:$8 sps:$4 sm:$0xff]  }
 0x1ff   :  { %4599 = vmatpush2.bf16.msra.mxu1 %v6505_v2  ;;  %v6601_v2 = vld [vmem:[#allocation2 + $0x1100] ss:$8 sps:$4 sm:$0xff]  }
 0x200   :  { %4600 = vmatprep.subr.bf16.mxu1 %v6513_v3  ;;  %v6609_v3 = vld [vmem:[#allocation2 + $0x11f4] ss:$8 sps:$4 sm:$0xff]  }
 0x201   :  { %4558 = vmatpush2.bf16.msra.mxu0 %v6508_v4  ;;  %v6604_v4 = vld [vmem:[#allocation2 + $0x10f0] ss:$8 sps:$4 sm:$0xff]  }
 0x202   :  { %4559 = vmatprep.subr.bf16.mxu0 %v6516_v5  ;;  %v6612_v5 = vld [vmem:[#allocation2 + $0x10e4] ss:$8 sps:$4 sm:$0xff]  }
 0x203   :  { %4601 = vmatpush2.bf16.msra.mxu1 %v6511_v6  ;;  %v6607_v6 = vld [vmem:[#allocation2 + $0x11f0] ss:$8 sps:$4 sm:$0xff]  }
 0x204   :  { %4602 = vmatprep.subr.bf16.mxu1 %v6519_v7  ;;  %v6615_v7 = vld [vmem:[#allocation2 + $0x11e4] ss:$8 sps:$4 sm:$0xff]  }
 0x205   :  { %4560 = vmatpush2.bf16.msra.mxu0 %v6514_v8  ;;  %v6610_v8 = vld [vmem:[#allocation2 + $0x10e0] ss:$8 sps:$4 sm:$0xff]  }
 0x206   :  { %4561 = vmatprep.subr.bf16.mxu0 %v6522_v9  ;;  %v6618_v9 = vld [vmem:[#allocation2 + $0x10d4] ss:$8 sps:$4 sm:$0xff]  }
 0x207   :  { %4603 = vmatpush2.bf16.msra.mxu1 %v6517_v10  ;;  %v6613_v10 = vld [vmem:[#allocation2 + $0x11e0] ss:$8 sps:$4 sm:$0xff]  }
 0x208   :  { %4604 = vmatprep.subr.bf16.mxu1 %v6525_v11  ;;  %v6621_v11 = vld [vmem:[#allocation2 + $0x11d4] ss:$8 sps:$4 sm:$0xff]  }
 0x209   :  { %4562 = vmatpush2.bf16.msra.mxu0 %v6520_v12  ;;  %v6616_v12 = vld [vmem:[#allocation2 + $0x10d0] ss:$8 sps:$4 sm:$0xff]  }
 0x20a   :  { %4563 = vmatprep.subr.bf16.mxu0 %v6528_v13  ;;  %v6624_v13 = vld [vmem:[#allocation2 + $0x10c4] ss:$8 sps:$4 sm:$0xff]  }
 0x20b   :  { %4605 = vmatpush2.bf16.msra.mxu1 %v6523_v14  ;;  %v6619_v14 = vld [vmem:[#allocation2 + $0x11d0] ss:$8 sps:$4 sm:$0xff]  }
 0x20c   :  { %4606 = vmatprep.subr.bf16.mxu1 %v6531_v15  ;;  %v6627_v15 = vld [vmem:[#allocation2 + $0x11c4] ss:$8 sps:$4 sm:$0xff]  }
 0x20d   :  { %4564 = vmatpush2.bf16.msra.mxu0 %v6526_v16  ;;  %v6622_v16 = vld [vmem:[#allocation2 + $0x10c0] ss:$8 sps:$4 sm:$0xff]  }
 0x20e   :  { %4565 = vmatprep.subr.bf16.mxu0 %v6534_v17  ;;  %v6630_v17 = vld [vmem:[#allocation2 + $0x10b4] ss:$8 sps:$4 sm:$0xff]  }
 0x20f   :  { %4607 = vmatpush2.bf16.msra.mxu1 %v6529_v18  ;;  %v6625_v18 = vld [vmem:[#allocation2 + $0x11c0] ss:$8 sps:$4 sm:$0xff]  }
 0x210   :  { %4608 = vmatprep.subr.bf16.mxu1 %v6537_v19  ;;  %v6633_v19 = vld [vmem:[#allocation2 + $0x11b4] ss:$8 sps:$4 sm:$0xff]  }
 0x211   :  { %4566 = vmatpush2.bf16.msra.mxu0 %v6532_v20  ;;  %v6628_v20 = vld [vmem:[#allocation2 + $0x10b0] ss:$8 sps:$4 sm:$0xff]  }
 0x212   :  { %4567 = vmatprep.subr.bf16.mxu0 %v6540_v21  ;;  %v6636_v21 = vld [vmem:[#allocation2 + $0x10a4] ss:$8 sps:$4 sm:$0xff]  }
 0x213   :  { %4609 = vmatpush2.bf16.msra.mxu1 %v6535_v22  ;;  %v6631_v22 = vld [vmem:[#allocation2 + $0x11b0] ss:$8 sps:$4 sm:$0xff]  }
 0x214   :  { %4610 = vmatprep.subr.bf16.mxu1 %v6543_v23  ;;  %v6639_v23 = vld [vmem:[#allocation2 + $0x11a4] ss:$8 sps:$4 sm:$0xff]  }
 0x215   :  { %4568 = vmatpush2.bf16.msra.mxu0 %v6538_v24  ;;  %v6634_v24 = vld [vmem:[#allocation2 + $0x10a0] ss:$8 sps:$4 sm:$0xff]  }
 0x216   :  { %4569 = vmatprep.subr.bf16.mxu0 %v6546_v25  ;;  %v6642_v25 = vld [vmem:[#allocation2 + $0x1094] ss:$8 sps:$4 sm:$0xff]  }
 0x217   :  { %4611 = vmatpush2.bf16.msra.mxu1 %v6541_v26  ;;  %v6637_v26 = vld [vmem:[#allocation2 + $0x11a0] ss:$8 sps:$4 sm:$0xff]  }
 0x218   :  { %4612 = vmatprep.subr.bf16.mxu1 %v6549_v27  ;;  %v6645_v27 = vld [vmem:[#allocation2 + $0x1194] ss:$8 sps:$4 sm:$0xff]  }
 0x219   :  { %4570 = vmatpush2.bf16.msra.mxu0 %v6544_v28  ;;  %v6640_v28 = vld [vmem:[#allocation2 + $0x1090] ss:$8 sps:$4 sm:$0xff]  }
 0x21a   :  { %4625 = vmatprep.subr.bf16.mxu0 %v6555_v29  ;;  %v6648_v29 = vld [vmem:[#allocation2 + $0x1084] ss:$8 sps:$4 sm:$0xff]  }
 0x21b   :  { %4613 = vmatpush2.bf16.msra.mxu1 %v6547_v30  ;;  %v6643_v30 = vld [vmem:[#allocation2 + $0x1190] ss:$8 sps:$4 sm:$0xff]  }
 0x21c   :  { %4572 = vmatmul.mubr.bf16.vlgmr.msra.gmra.mxu0 %v6550_v31  ;;  %4668 = vmatprep.subr.bf16.mxu1 %v6561_v32  ;;  %v6651_v31 = vld [vmem:[#allocation2 + $0x1184] ss:$8 sps:$4 sm:$0xff]   ;;  %v6646_v32 = vld [vmem:[#allocation2 + $0x1080] ss:$8 sps:$4 sm:$0xff]  }
 0x21d   :  { %4626 = vmatpush1.bf16.msra.mxu0 %v6553_v33  ;;  %4657 = vmatprep.mubr.bf16.mxu0 %v6654_v34  ;;  %v6657_v33 = vld [vmem:[#allocation2 + $0x1274] ss:$8 sps:$4 sm:$0xff]   ;;  %v6649_v34 = vld [vmem:[#allocation2 + $0x1180] ss:$8 sps:$4 sm:$0xff]  }
 0x21e   :  { %4615 = vmatmul.mubr.bf16.vlgmr.msra.gmra.mxu1 %v6556_v35  ;;  %4627 = vmatprep.subr.bf16.mxu0 %v6564_v36  ;;  %v6652_v35 = vld [vmem:[%s7042_s0 + $0x80] ss:$152 sps:$4 sm:$0xff]  }
 0x21f   :  { %4669 = vmatpush1.bf16.msra.mxu1 %v6559_v37  ;;  %4700 = vmatprep.mubr.bf16.mxu1 %v6660_v38  ;;  %v6655_v36 = vld [vmem:[#allocation2 + $0x1270] ss:$8 sps:$4 sm:$0xff]   ;;  %v6708_v37 = vld [vmem:[%s7042_s0 + $0x94] ss:$152 sps:$4 sm:$0xff]   ;;  %v6658_v38 = vld [vmem:[%s7042_s0 + $0x88] ss:$152 sps:$4 sm:$0xff]  }
 0x220   :  { %4670 = vmatprep.subr.bf16.mxu1 %v6567_v39  ;;  %v6663_v39 = vld [vmem:[#allocation2 + $0x1264] ss:$8 sps:$4 sm:$0xff]  }
 0x221   :  { %4628 = vmatpush1.bf16.msra.mxu0 %v6562_v40  ;;  %v6661_v40 = vld [vmem:[#allocation2 + $0x1260] ss:$8 sps:$4 sm:$0xff]  }
 0x222   :  { %4629 = vmatprep.subr.bf16.mxu0 %v6570_v41  ;;  %v6666_v41 = vld [vmem:[#allocation2 + $0x1254] ss:$8 sps:$4 sm:$0xff]  }
 0x223   :  { %4671 = vmatpush1.bf16.msra.mxu1 %v6565_v42  ;;  %v6664_v42 = vld [vmem:[#allocation2 + $0x1250] ss:$8 sps:$4 sm:$0xff]  }
 0x224   :  { %4672 = vmatprep.subr.bf16.mxu1 %v6573_v43  ;;  %v6669_v43 = vld [vmem:[#allocation2 + $0x1244] ss:$8 sps:$4 sm:$0xff]  }
 0x225   :  { %4630 = vmatpush1.bf16.msra.mxu0 %v6568_v44  ;;  %v6667_v44 = vld [vmem:[#allocation2 + $0x1240] ss:$8 sps:$4 sm:$0xff]  }
 0x226   :  { %4631 = vmatprep.subr.bf16.mxu0 %v6576_v45  ;;  %v6672_v45 = vld [vmem:[#allocation2 + $0x1234] ss:$8 sps:$4 sm:$0xff]  }
 0x227   :  { %4673 = vmatpush1.bf16.msra.mxu1 %v6571_v46  ;;  %v6670_v46 = vld [vmem:[#allocation2 + $0x1230] ss:$8 sps:$4 sm:$0xff]  }
 0x228   :  { %4674 = vmatprep.subr.bf16.mxu1 %v6579_v47  ;;  %v6675_v47 = vld [vmem:[#allocation2 + $0x1224] ss:$8 sps:$4 sm:$0xff]  }
 0x229   :  { %4632 = vmatpush1.bf16.msra.mxu0 %v6574_v48  ;;  %v6673_v48 = vld [vmem:[#allocation2 + $0x1220] ss:$8 sps:$4 sm:$0xff]  }
 0x22a   :  { %4633 = vmatprep.subr.bf16.mxu0 %v6582_v49  ;;  %v6678_v49 = vld [vmem:[#allocation2 + $0x1214] ss:$8 sps:$4 sm:$0xff]  }
 0x22b   :  { %4675 = vmatpush1.bf16.msra.mxu1 %v6577_v50  ;;  %v6676_v50 = vld [vmem:[#allocation2 + $0x1210] ss:$8 sps:$4 sm:$0xff]  }
 0x22c   :  { %4676 = vmatprep.subr.bf16.mxu1 %v6585_v51  ;;  %v6681_v51 = vld [vmem:[#allocation2 + $0x1204] ss:$8 sps:$4 sm:$0xff]  }
 0x22d   :  { %4634 = vmatpush1.bf16.msra.mxu0 %v6580_v52  ;;  %v6679_v52 = vld [vmem:[#allocation2 + $0x1200] ss:$8 sps:$4 sm:$0xff]  }
 0x22e   :  { %4635 = vmatprep.subr.bf16.mxu0 %v6588_v53  ;;  %v6684_v53 = vld [vmem:[#allocation2 + $0x12f4] ss:$8 sps:$4 sm:$0xff]  }
 0x22f   :  { %4677 = vmatpush1.bf16.msra.mxu1 %v6583_v54  ;;  %v6682_v54 = vld [vmem:[#allocation2 + $0x12f0] ss:$8 sps:$4 sm:$0xff]  }
 0x230   :  { %4678 = vmatprep.subr.bf16.mxu1 %v6591_v55  ;;  %v6687_v55 = vld [vmem:[#allocation2 + $0x12e4] ss:$8 sps:$4 sm:$0xff]  }
 0x231   :  { %4636 = vmatpush1.bf16.msra.mxu0 %v6586_v56  ;;  %v6685_v56 = vld [vmem:[#allocation2 + $0x12e0] ss:$8 sps:$4 sm:$0xff]  }
 0x232   :  { %4637 = vmatprep.subr.bf16.mxu0 %v6594_v57  ;;  %v6690_v57 = vld [vmem:[#allocation2 + $0x12d4] ss:$8 sps:$4 sm:$0xff]  }
 0x233   :  { %4679 = vmatpush1.bf16.msra.mxu1 %v6589_v58  ;;  %v6688_v58 = vld [vmem:[#allocation2 + $0x12d0] ss:$8 sps:$4 sm:$0xff]  }
 0x234   :  { %4680 = vmatprep.subr.bf16.mxu1 %v6597_v59  ;;  %v6693_v59 = vld [vmem:[#allocation2 + $0x12c4] ss:$8 sps:$4 sm:$0xff]  }
 0x235   :  { %4638 = vmatpush1.bf16.msra.mxu0 %v6592_v60  ;;  %v6691_v60 = vld [vmem:[#allocation2 + $0x12c0] ss:$8 sps:$4 sm:$0xff]  }
 0x236   :  { %4639 = vmatprep.subr.bf16.mxu0 %v6600_v61  ;;  %v6696_v61 = vld [vmem:[#allocation2 + $0x12b4] ss:$8 sps:$4 sm:$0xff]  }
 0x237   :  { %4681 = vmatpush1.bf16.msra.mxu1 %v6595_v62  ;;  %v6694_v62 = vld [vmem:[#allocation2 + $0x12b0] ss:$8 sps:$4 sm:$0xff]  }
 0x238   :  { %4682 = vmatprep.subr.bf16.mxu1 %v6603_v63  ;;  %v6699_v63 = vld [vmem:[#allocation2 + $0x12a4] ss:$8 sps:$4 sm:$0xff]  }
 0x239   :  { %4640 = vmatpush1.bf16.msra.mxu0 %v6598_v0  ;;  %v6697_v0 = vld [vmem:[#allocation2 + $0x12a0] ss:$8 sps:$4 sm:$0xff]  }
 0x23a   :  { %4641 = vmatprep.subr.bf16.mxu0 %v6606_v1  ;;  %v6702_v1 = vld [vmem:[#allocation2 + $0x1294] ss:$8 sps:$4 sm:$0xff]  }
 0x23b   :  { %4683 = vmatpush1.bf16.msra.mxu1 %v6601_v2  ;;  %v6700_v2 = vld [vmem:[#allocation2 + $0x1290] ss:$8 sps:$4 sm:$0xff]  }
 0x23c   :  { %4684 = vmatprep.subr.bf16.mxu1 %v6609_v3  ;;  %v6705_v3 = vld [vmem:[#allocation2 + $0x1284] ss:$8 sps:$4 sm:$0xff]  }
 0x23d   :  { %4642 = vmatpush2.bf16.msra.mxu0 %v6604_v4  ;;  %v6703_v4 = vld [vmem:[#allocation2 + $0x1280] ss:$8 sps:$4 sm:$0xff]  }
 0x23e   :  { %4643 = vmatprep.subr.bf16.mxu0 %v6612_v5  ;;  %v6706_v5 = vld [vmem:[%s7042_s0 + $0x90] ss:$152 sps:$4 sm:$0xff]  }
 0x23f   :  { %4685 = vmatpush2.bf16.msra.mxu1 %v6607_v6  ;;  %v6709_v6 = vld [vmem:[%s7044_s2 + $0x78] sm:$0xff]  }
 0x240   :  { %4686 = vmatprep.subr.bf16.mxu1 %v6615_v7  ;;  %v6710_v7 = vld [vmem:[%s7044_s2 + $0x38] sm:$0xff]  }
 0x241   :  { %4644 = vmatpush2.bf16.msra.mxu0 %v6610_v8  ;;  %v6711_v8 = vld [vmem:[%s7044_s2 + $0x70] sm:$0xff]  }
 0x242   :  { %4645 = vmatprep.subr.bf16.mxu0 %v6618_v9  ;;  %v6712_v9 = vld [vmem:[%s7044_s2 + $0x30] sm:$0xff]  }
 0x243   :  { %4687 = vmatpush2.bf16.msra.mxu1 %v6613_v10  ;;  %v6713_v10 = vld [vmem:[%s7044_s2 + $0x68] sm:$0xff]  }
 0x244   :  { %4688 = vmatprep.subr.bf16.mxu1 %v6621_v11  ;;  %v6714_v11 = vld [vmem:[%s7044_s2 + $0x28] sm:$0xff]  }
 0x245   :  { %4646 = vmatpush2.bf16.msra.mxu0 %v6616_v12  ;;  %v6715_v12 = vld [vmem:[%s7044_s2 + $0x60] sm:$0xff]  }
 0x246   :  { %4647 = vmatprep.subr.bf16.mxu0 %v6624_v13  ;;  %v6716_v13 = vld [vmem:[%s7044_s2 + $0x20] sm:$0xff]  }
 0x247   :  { %4689 = vmatpush2.bf16.msra.mxu1 %v6619_v14  ;;  %v6717_v14 = vld [vmem:[%s7044_s2 + $0x58] sm:$0xff]  }
 0x248   :  { %4690 = vmatprep.subr.bf16.mxu1 %v6627_v15  ;;  %v6718_v15 = vld [vmem:[%s7044_s2 + $0x18] sm:$0xff]  }
 0x249   :  { %4648 = vmatpush2.bf16.msra.mxu0 %v6622_v16  ;;  %v6719_v16 = vld [vmem:[%s7044_s2 + $0x50] sm:$0xff]  }
 0x24a   :  { %4649 = vmatprep.subr.bf16.mxu0 %v6630_v17  ;;  %v6720_v17 = vld [vmem:[%s7044_s2 + $0x10] sm:$0xff]  }
 0x24b   :  { %4691 = vmatpush2.bf16.msra.mxu1 %v6625_v18  ;;  %v6965_v18 = vpop.f32.mrf.mxu0 }
 0x24c   :  { %4692 = vmatprep.subr.bf16.mxu1 %v6633_v19  ;;  %v6721_v19 = vld [vmem:[%s7044_s2 + $0x48] sm:$0xff]  }
 0x24d   :  { %4650 = vmatpush2.bf16.msra.mxu0 %v6628_v20  ;;  %v6722_v20 = vld [vmem:[%s7044_s2 + $0x8] sm:$0xff]  }
 0x24e   :  { %4651 = vmatprep.subr.bf16.mxu0 %v6636_v21  ;;  %v3973_v21 = vpop.f32.mrf.mxu0 }
 0x24f   :  { %4693 = vmatpush2.bf16.msra.mxu1 %v6631_v22  ;;  %v6973_v22 = vpop.f32.mrf.mxu1 }
 0x250   :  { %4694 = vmatprep.subr.bf16.mxu1 %v6639_v23  ;;  %v6723_v23 = vld [vmem:[%s7044_s2 + $0x40] sm:$0xff]  }
 0x251   :  { %4652 = vmatpush2.bf16.msra.mxu0 %v6634_v24  ;;  %v6724_v24 = vld [vmem:[%s7044_s2] sm:$0xff]  }
 0x252   :  { %4653 = vmatprep.subr.bf16.mxu0 %v6642_v25  ;;  %v3975_v25 = vpop.f32.mrf.mxu0 }
 0x253   :  { %4695 = vmatpush2.bf16.msra.mxu1 %v6637_v26  ;;  %v4016_v26 = vpop.f32.mrf.mxu1 }
 0x254   :  { %4696 = vmatprep.subr.bf16.mxu1 %v6645_v27  ;;  %v3977_v27 = vpop.f32.mrf.mxu0 }
 0x255   :  { %4654 = vmatpush2.bf16.msra.mxu0 %v6640_v28  ;;  %v4018_v28 = vpop.f32.mrf.mxu1 }
 0x256   :  { %4655 = vmatprep.subr.bf16.mxu0 %v6648_v29  ;;  %v7048_v29 = vmov 0.0  }
 0x257   :  { %4697 = vmatpush2.bf16.msra.mxu1 %v6643_v30  ;;  %v4057_v30 = vpop.f32.mrf.mxu0 }
 0x258   :  { %4698 = vmatprep.subr.bf16.mxu1 %v6651_v31  ;;  %v4020_v31 = vpop.f32.mrf.mxu1 }
 0x259   :  { %4656 = vmatpush2.bf16.msra.mxu0 %v6646_v32  ;;  %v4059_v32 = vpop.f32.mrf.mxu0 }
 0x25a   :  { %4711 = vmatprep.subr.bf16.mxu0 %v6657_v33  ;;  %v4100_v33 = vpop.f32.mrf.mxu1 }
 0x25b   :  { %4699 = vmatpush2.bf16.msra.mxu1 %v6649_v34  ;;  %v4061_v34 = vpop.f32.mrf.mxu0 }
 0x25c   :  { %4658 = vmatmul.mubr.bf16.vlgmr.msra.gmra.mxu0 %v6652_v35  ;;  %5695 = vmatprep.subr.bf16.mxu1 %v6709_v6  ;;  %v4102_v35 = vpop.f32.mrf.mxu1 }
 0x25d   :  { %4712 = vmatpush1.bf16.msra.mxu0 %v6655_v36  ;;  %4743 = vmatprep.mubr.bf16.mxu0 %v6708_v37  ;;  %v4063_v36 = vpop.f32.mrf.mxu0 }
 0x25e   :  { %4701 = vmatmul.mubr.bf16.vlgmr.msra.gmra.mxu1 %v6658_v38  ;;  %4713 = vmatprep.subr.bf16.mxu0 %v6663_v39  ;;  %v4104_v37 = vpop.f32.mrf.mxu1 }
 0x25f   :  { %5696 = vmatpush3.bf16.msra.mxu1 %v6710_v7  ;;  %v4143_v38 = vpop.f32.mrf.mxu0 }
 0x260   :  { %5697 = vmatprep.subr.bf16.mxu1 %v6711_v8  ;;  %v4106_v39 = vpop.f32.mrf.mxu1 }
 0x261   :  { %4714 = vmatpush1.bf16.msra.mxu0 %v6661_v40  ;;  %v4145_v40 = vpop.f32.mrf.mxu0 }
 0x262   :  { %4715 = vmatprep.subr.bf16.mxu0 %v6666_v41  ;;  %v6982_v41 = vpop.f32.mrf.mxu1 }
 0x263   :  { %5698 = vmatpush3.bf16.msra.mxu1 %v6712_v9 }
 0x264   :  { %5699 = vmatprep.subr.bf16.mxu1 %v6713_v10 }
 0x265   :  { %4716 = vmatpush1.bf16.msra.mxu0 %v6664_v42  ;;  %v4147_v42 = vpop.f32.mrf.mxu0 }
 0x266   :  { %4717 = vmatprep.subr.bf16.mxu0 %v6669_v43  ;;  %v4188_v43 = vpop.f32.mrf.mxu1 }
 0x267   :  { %5700 = vmatpush3.bf16.msra.mxu1 %v6714_v11 }
 0x268   :  { %5701 = vmatprep.subr.bf16.mxu1 %v6715_v12 }
 0x269   :  { %4718 = vmatpush1.bf16.msra.mxu0 %v6667_v44  ;;  %v4149_v44 = vpop.f32.mrf.mxu0 }
 0x26a   :  { %4719 = vmatprep.subr.bf16.mxu0 %v6672_v45  ;;  %v4190_v45 = vpop.f32.mrf.mxu1 }
 0x26b   :  { %5702 = vmatpush3.bf16.msra.mxu1 %v6716_v13 }
 0x26c   :  { %5703 = vmatprep.subr.bf16.mxu1 %v6717_v14 }
 0x26d   :  { %4720 = vmatpush1.bf16.msra.mxu0 %v6670_v46  ;;  %v6984_v46 = vpop.f32.mrf.mxu0 }
 0x26e   :  { %4721 = vmatprep.subr.bf16.mxu0 %v6675_v47  ;;  %v4192_v47 = vpop.f32.mrf.mxu1 }
 0x26f   :  { %5704 = vmatpush3.bf16.msra.mxu1 %v6718_v15 }
 0x270   :  { %5705 = vmatprep.subr.bf16.mxu1 %v6719_v16 }
 0x271   :  { %4722 = vmatpush1.bf16.msra.mxu0 %v6673_v48  ;;  %v4231_v48 = vpop.f32.mrf.mxu0 }
 0x272   :  { %4723 = vmatprep.subr.bf16.mxu0 %v6678_v49  ;;  %v6986_v49 = vpop.f32.mrf.mxu1 }
 0x273   :  { %5706 = vmatpush3.bf16.msra.mxu1 %v6720_v17 }
 0x274   :  { %5707 = vmatprep.subr.bf16.mxu1 %v6721_v19 }
 0x275   :  { %4724 = vmatpush1.bf16.msra.mxu0 %v6676_v50  ;;  %v4233_v50 = vpop.f32.mrf.mxu0 }
 0x276   :  { %4725 = vmatprep.subr.bf16.mxu0 %v6681_v51  ;;  %v6988_v51 = vpop.f32.mrf.mxu1 }
 0x277   :  { %5708 = vmatpush3.bf16.msra.mxu1 %v6722_v20 }
 0x278   :  { %5709 = vmatprep.subr.bf16.mxu1 %v6723_v23 }
 0x279   :  { %4726 = vmatpush1.bf16.msra.mxu0 %v6679_v52  ;;  %v4235_v52 = vpop.f32.mrf.mxu0 }
 0x27a   :  { %4727 = vmatprep.subr.bf16.mxu0 %v6684_v53  ;;  %v4276_v53 = vpop.f32.mrf.mxu1 }
 0x27b   :  { %5710 = vmatpush3.bf16.msra.mxu1 %v6724_v24 }
 0x27c   :  { %5722 = vmatprep.subr.bf16.mxu1 %v7048_v29 }
 0x27d   :  { %4728 = vmatpush2.bf16.msra.mxu0 %v6682_v54  ;;  %v6990_v54 = vpop.f32.mrf.mxu0 }
 0x27e   :  { %4729 = vmatprep.subr.bf16.mxu0 %v6687_v55  ;;  %v6992_v55 = vpop.f32.mrf.mxu1 }
 0x281   :  { %4730 = vmatpush2.bf16.msra.mxu0 %v6685_v56  ;;  %v6994_v56 = vpop.f32.mrf.mxu0 }
 0x282   :  { %4731 = vmatprep.subr.bf16.mxu0 %v6690_v57  ;;  %v6996_v57 = vpop.f32.mrf.mxu1 }
 0x285   :  { %4732 = vmatpush2.bf16.msra.mxu0 %v6688_v58  ;;  %v697_v58 = vlaneseq }
 0x286   :  { %4733 = vmatprep.subr.bf16.mxu0 %v6693_v59  ;;  %v4319_v59 = vpop.f32.mrf.mxu0 }
 0x289   :  { %4734 = vmatpush2.bf16.msra.mxu0 %v6691_v60  ;;  %v6998_v60 = vpop.f32.mrf.mxu1 }
 0x28a   :  { %4735 = vmatprep.subr.bf16.mxu0 %v6696_v61  ;;  %v698_v61 = vshrl.u32 %v697_v58, 7 }
 0x28d   :  { %4736 = vmatpush2.bf16.msra.mxu0 %v6694_v62  ;;  %v4321_v62 = vpop.f32.mrf.mxu0 }
 0x28e   :  { %4737 = vmatprep.subr.bf16.mxu0 %v6699_v63  ;;  %v7000_v63 = vpop.f32.mrf.mxu1 }
 0x291   :  { %4738 = vmatpush2.bf16.msra.mxu0 %v6697_v0  ;;  %v703_v0 = vsub.s32 1, %v698_v61 }
 0x292   :  { %4739 = vmatprep.subr.bf16.mxu0 %v6702_v1  ;;  %v47_v1 = vld [vmem:[#allocation4] ss:$4 sm:$0x3] }
 0x295   :  { %4740 = vmatpush2.bf16.msra.mxu0 %v6700_v2  ;;  %v699_v2 = vsub.s32 0, %v698_v61 }
 0x296   :  { %4741 = vmatprep.subr.bf16.mxu0 %v6705_v3  ;;  %v7002_v3 = vpop.f32.mrf.mxu0 }
 0x297   :  { %v700_v6 = vrot.slane %v47_v1, %v699_v2 }
 0x298   :  { %v4403_v7 = vpop.f32.mrf.mxu0 }
 0x299   :  { %4742 = vmatpush2.bf16.msra.mxu0 %v6703_v4  ;;  %v4364_v4 = vpop.f32.mrf.mxu1  ;;  %v3976_v10 = vadd.f32 %v3975_v25, %v700_v6  ;;  %v3972_v11 = vadd.f32 %v6965_v18, %v700_v6 }
 0x29a   :  { %v4405_v12 = vpop.f32.mrf.mxu0 }
 0x29b   :  { %v7004_v8 = vpop.f32.mrf.mxu1  ;;  %v4019_v16 = vadd.f32 %v4018_v28, %v3976_v10  ;;  %v4015_v17 = vadd.f32 %v6973_v22, %v3972_v11 }
 0x29c   :  { %4744 = vmatmul.mubr.bf16.vlgmr.msra.gmra.mxu0 %v6706_v5  ;;  %v704_v5 = vrot.slane %v47_v1, %v703_v0  ;;  %7050 = vst [vmem:[#allocation8_spill] sm:$0xff] %v7004_v8  ;;  %v4407_v19 = vpop.f32.mrf.mxu0 }
 0x29d   :  { %v4446_v13 = vpop.f32.mrf.mxu1  ;;  %v4062_v58 = vadd.f32 %v4061_v34, %v4019_v16  ;;  %v4058_v61 = vadd.f32 %v4057_v30, %v4015_v17 }
 0x29e   :  { %v3974_v9 = vadd.f32 %v3973_v21, %v704_v5  ;;  %v3978_v14 = vadd.f32 %v3977_v27, %v704_v5  ;;  %v4487_v0 = vpop.f32.mrf.mxu0 }
 0x29f   :  { %v4448_v20 = vpop.f32.mrf.mxu1  ;;  %v4105_v25 = vadd.f32 %v4104_v37, %v4062_v58  ;;  %v4101_v29 = vadd.f32 %v4100_v33, %v4058_v61 }
 0x2a0   :  { %v4017_v15 = vadd.f32 %v4016_v26, %v3974_v9  ;;  %v4021_v23 = vadd.f32 %v4020_v31, %v3978_v14  ;;  %v4489_v18 = vpop.f32.mrf.mxu0 }
 0x2a1   :  { %v4450_v2 = vpop.f32.mrf.mxu1  ;;  %v4148_v26 = vadd.f32 %v4147_v42, %v4105_v25  ;;  %v4144_v28 = vadd.f32 %v4143_v38, %v4101_v29 }
 0x2a2   :  { %v4060_v24 = vadd.f32 %v4059_v32, %v4017_v15  ;;  %v4064_v1 = vadd.f32 %v4063_v36, %v4021_v23  ;;  %v4491_v22 = vpop.f32.mrf.mxu0 }
 0x2a3   :  { %v4530_v6 = vpop.f32.mrf.mxu1  ;;  %v4191_v31 = vadd.f32 %v4190_v45, %v4148_v26  ;;  %v4187_v32 = vadd.f32 %v6982_v41, %v4144_v28  ;;  %v7051_v23 = vld [vmem:[#allocation8_spill] sm:$0xff] }
 0x2a4   :  { %v4103_v21 = vadd.f32 %v4102_v35, %v4060_v24  ;;  %v4107_v8 = vadd.f32 %v4106_v39, %v4064_v1  ;;  %v4493_v37 = vpop.f32.mrf.mxu0 }
 0x2a5   :  { %v4532_v9 = vpop.f32.mrf.mxu1  ;;  %v4234_v36 = vadd.f32 %v4233_v50, %v4191_v31  ;;  %v4230_v35 = vadd.f32 %v6984_v46, %v4187_v32 }
 0x2a6   :  { %v4146_v27 = vadd.f32 %v4145_v40, %v4103_v21  ;;  %v4150_v5 = vadd.f32 %v4149_v44, %v4107_v8 }
 0x2a7   :  { %v4534_v33 = vpop.f32.mrf.mxu1  ;;  %v4277_v40 = vadd.f32 %v4276_v53, %v4234_v36  ;;  %v4273_v29 = vadd.f32 %v6986_v49, %v4230_v35 }
 0x2a8   :  { %v4189_v10 = vadd.f32 %v4188_v43, %v4146_v27  ;;  %v4193_v30 = vadd.f32 %v4192_v47, %v4150_v5 }
 0x2a9   :  { %v4536_v38 = vpop.f32.mrf.mxu1  ;;  %v4320_v41 = vadd.f32 %v4319_v59, %v4277_v40  ;;  %v4316_v44 = vadd.f32 %v6990_v54, %v4273_v29 }
 0x2aa   :  { %v4232_v34 = vadd.f32 %v4231_v48, %v4189_v10  ;;  %v4236_v11 = vadd.f32 %v4235_v52, %v4193_v30 }
 0x2ab   :  { %v4363_v50 = vadd.f32 %v7000_v63, %v4320_v41 }
 0x2ac   :  { %v4275_v39 = vadd.f32 %v6988_v51, %v4232_v34  ;;  %v4279_v42 = vadd.f32 %v6992_v55, %v4236_v11  ;;  %v4359_v51 = vadd.f32 %v6996_v57, %v4316_v44 }
 0x2ad   :  { %v4406_v15 = vadd.f32 %v4405_v12, %v4363_v50  ;;  %v7052_v50 = vmov 0.0  }
 0x2ae   :  { %v4318_v43 = vadd.f32 %v6994_v56, %v4275_v39  ;;  %v4322_v46 = vadd.f32 %v4321_v62, %v4279_v42  ;;  %v4402_v55 = vadd.f32 %v7002_v3, %v4359_v51  ;;  %v6726_v51 = vld [vmem:[%s7045_s3 + $0x10] sm:$0xff]  }
 0x2af   :  { %v4449_v17 = vadd.f32 %v4448_v20, %v4406_v15 }
 0x2b0   :  { %v4361_v48 = vadd.f32 %v6998_v60, %v4318_v43  ;;  %v4365_v49 = vadd.f32 %v4364_v4, %v4322_v46  ;;  %v4445_v62 = vadd.f32 %v7051_v23, %v4402_v55  ;;  %v5672_v55 = vld [vmem:[#allocation4 + $0x1] ss:$0 sm:$0xff] }
 0x2b1   :  { %v4492_v63 = vadd.f32 %v4491_v22, %v4449_v17 }
 0x2b2   :  { %v4404_v8 = vadd.f32 %v4403_v7, %v4361_v48  ;;  %v4408_v56 = vadd.f32 %v4407_v19, %v4365_v49  ;;  %v4488_v61 = vadd.f32 %v4487_v0, %v4445_v62  ;;  %v6725_v48 = vld [vmem:[%s7045_s3 + $0x18] sm:$0xff]  }
 0x2b3   :  { %v4535_v12 = vadd.f32 %v4534_v33, %v4492_v63 }
 0x2b4   :  { %v4447_v54 = vadd.f32 %v4446_v13, %v4404_v8  ;;  %v4451_v60 = vadd.f32 %v4450_v2, %v4408_v56  ;;  %v4531_v25 = vadd.f32 %v4530_v6, %v4488_v61 }
 0x2b6   :  { %v4490_v58 = vadd.f32 %v4489_v18, %v4447_v54  ;;  %v4494_v1 = vadd.f32 %v4493_v37, %v4451_v60  ;;  %v5689_v60 = vld [vmem:[#allocation4 + $0x2] ss:$0 sm:$0xff] }
 0x2b8   :  { %v4533_v7 = vadd.f32 %v4532_v9, %v4490_v58  ;;  %v4537_v3 = vadd.f32 %v4536_v38, %v4494_v1 }
 0x2dc   :  { %v4573_v14 = vpop.f32.mrf.mxu0 }
 0x2dd   :  { %v4574_v26 = vadd.f32 %v4573_v14, %v4531_v25 }
 0x2de   :  { %v4575_v45 = vpop.f32.mrf.mxu0  ;;  %v4616_v47 = vpop.f32.mrf.mxu1 }
 0x2df   :  { %v4576_v19 = vadd.f32 %v4575_v45, %v4533_v7  ;;  %v4617_v2 = vadd.f32 %v4616_v47, %v4574_v26 }
 0x2e0   :  { %v4577_v52 = vpop.f32.mrf.mxu0  ;;  %v4618_v53 = vpop.f32.mrf.mxu1 }
 0x2e1   :  { %v4578_v27 = vadd.f32 %v4577_v52, %v4535_v12  ;;  %v4619_v5 = vadd.f32 %v4618_v53, %v4576_v19  ;;  %v6727_v52 = vld [vmem:[%s7045_s3 + $0x8] sm:$0xff]   ;;  %v6728_v53 = vld [vmem:[%s7045_s3] sm:$0xff]  }
 0x2e2   :  { %v4579_v59 = vpop.f32.mrf.mxu0  ;;  %v4620_v16 = vpop.f32.mrf.mxu1 }
 0x2e3   :  { %v4580_v28 = vadd.f32 %v4579_v59, %v4537_v3  ;;  %v4621_v10 = vadd.f32 %v4620_v16, %v4578_v27 }
 0x2e4   :  { %v4622_v57 = vpop.f32.mrf.mxu1 }
 0x2e5   :  { %v4623_v0 = vadd.f32 %v4622_v57, %v4580_v28 }
 0x31c   :  { %v4659_v24 = vpop.f32.mrf.mxu0 }
 0x31d   :  { %v4660_v30 = vadd.f32 %v4659_v24, %v4617_v2 }
 0x31e   :  { %v4661_v21 = vpop.f32.mrf.mxu0  ;;  %v4702_v4 = vpop.f32.mrf.mxu1 }
 0x31f   :  { %v4662_v31 = vadd.f32 %v4661_v21, %v4619_v5  ;;  %v4703_v33 = vadd.f32 %v4702_v4, %v4660_v30 }
 0x320   :  { %v4663_v13 = vpop.f32.mrf.mxu0  ;;  %v4704_v20 = vpop.f32.mrf.mxu1 }
 0x321   :  { %v4664_v32 = vadd.f32 %v4663_v13, %v4621_v10  ;;  %v4705_v35 = vadd.f32 %v4704_v20, %v4662_v31 }
 0x322   :  { %v4665_v18 = vpop.f32.mrf.mxu0  ;;  %v4706_v22 = vpop.f32.mrf.mxu1 }
 0x323   :  { %v4666_v9 = vadd.f32 %v4665_v18, %v4623_v0  ;;  %v4707_v37 = vadd.f32 %v4706_v22, %v4664_v32 }
 0x324   :  { %v4708_v36 = vpop.f32.mrf.mxu1 }
 0x325   :  { %v4709_v14 = vadd.f32 %v4708_v36, %v4666_v9 }
 0x35c   :  { %v4745_v34 = vpop.f32.mrf.mxu0 }
 0x35d   :  { %v4746_v29 = vadd.f32 %v4745_v34, %v4703_v33 }
 0x35e   :  { %v4747_v6 = vpop.f32.mrf.mxu0 }
 0x35f   :  { %v4748_v39 = vadd.f32 %v4747_v6, %v4705_v35  ;;  %v4754_v45 = vmax.f32 %v4746_v29, 0.0 }
 0x360   :  { %v4749_v11 = vpop.f32.mrf.mxu0 }
 0x361   :  { %v4750_v40 = vadd.f32 %v4749_v11, %v4707_v37  ;;  %v4755_v41 = vmax.f32 %v4748_v39, 0.0 }
 0x362   :  { %v4751_v38 = vpop.f32.mrf.mxu0 }
 0x363   :  { %v4752_v42 = vadd.f32 %v4751_v38, %v4709_v14  ;;  %v4756_v43 = vmax.f32 %v4750_v40, 0.0 }
 0x365   :  { %v4757_v44 = vmax.f32 %v4752_v42, 0.0  ;;  %v4758_v46 = vpack.c.bf16 %v4756_v43, %v4754_v45 }
 0x367   :  { %v4759_v47 = vpack.c.bf16 %v4757_v44, %v4755_v41 }
 0x369   :  { %4924 = vmatprep.mubr.bf16.mxu1 %v4759_v47 }
 0x36a   :  { %4925 = vmatmul.mubr.bf16.vlgmr.msra.gmra.mxu1 %v4758_v46 }
 0x36b   :  { %5723 = vmatpush3.bf16.msra.mxu1 %v6725_v48  ;;  %5730 = vmatprep.mubr.msk.bf16.mxu1 %vm6778_vm0, %v7052_v50 }
 0x36c   :  { %5724 = vmatprep.subr.bf16.mxu1 %v7052_v50 }
 0x36f   :  { %5725 = vmatpush3.bf16.msra.mxu1 %v6726_v51 }
 0x370   :  { %5726 = vmatprep.subr.bf16.mxu1 %v7052_v50 }
 0x373   :  { %5727 = vmatpush3.bf16.msra.mxu1 %v6727_v52 }
 0x374   :  { %5728 = vmatprep.subr.bf16.mxu1 %v7052_v50 }
 0x377   :  { %5729 = vmatpush3.bf16.msra.mxu1 %v6728_v53 }
 0x42a   :  { %v5711_v49 = vpop.f32.mrf.mxu1 }
 0x42c   :  { %v5712_v8 = vpop.f32.mrf.mxu1 }
 0x42d   :  { %v5713_v15 = vadd.f32 %v5712_v8, %v5711_v49 }
 0x42e   :  { %v5714_v56 = vpop.f32.mrf.mxu1 }
 0x42f   :  { %v4927_v16 = vadd.f32 %v5713_v15, %v5672_v55 }
 0x430   :  { %v5715_v59 = vpop.f32.mrf.mxu1 }
 0x431   :  { %v5716_v54 = vadd.f32 %v5715_v59, %v5714_v56  ;;  %v4933_v23 = vmax.f32 %v4927_v16, 0.0 }
 0x433   :  { %v4930_v17 = vadd.f32 %v5716_v54, %v5672_v55 }
 0x435   :  { %v4934_v62 = vmax.f32 %v4930_v17, 0.0 }
 0x437   :  { %v4935_v24 = vpack.c.bf16 %v4934_v62, %v4933_v23 }
 0x439   :  { %5731 = vmatmul.mubr.msk.bf16.vlgmr.msra.gmra.mxu1 %vm4972_vm1, %v4935_v24 }
 0x4f9   :  { %v5010_v58 = vpop.f32.mrf.mxu1 }
 0x4fa   :  { %v5011_v63 = vadd.f32 %v5689_v60, %v5010_v58 }
 0x4fb   :  { %v5732_v61 = vpop.f32.mrf.mxu1 }
 0x4fc   :  { %5018 = vst.msk [vmem:[%s7047_s5] sm:$0xff] %vm5017_vm2, %v5011_v63 }
 0x4fd   :  { %v5013_v57 = vpop.f32.mrf.mxu1 }
 0x4fe   :  { %v5014_v1 = vadd.f32 %v5689_v60, %v5013_v57 }
 0x4ff   :  { %v5733_v21 = vpop.f32.mrf.mxu1 }
 0x500   :  { %5019 = vst.msk [vmem:[%s7047_s5 + $0x8] sm:$0xff] %vm5017_vm2, %v5014_v1 }
 0x501   :  { %5024 = vsyncpa [#allocation3], 1 }
 0x502   :  { %5025 = vsyncpa [#allocation5], 1 }

</bundles_post_ra>
